<compile_context>
chip_gen: v5e
topology: v5e:2x2
jax: 0.10.0
libtpu: 0.0.40
codegen_flags: <defaults>
</compile_context>

<pallas_src>
import numpy as np
import jax
import jax.numpy as jnp
from jax import lax
from jax.experimental import pallas as pl

# =============================================================================
# configuration (matches the PyTorch module's constructor arguments)
# =============================================================================
BATCH = 2
N_VERTEX = 16                       # graph nodes
N_HIS = 8                           # input time steps
KT = 3                              # temporal kernel size
KS = 3                              # Chebyshev order
BLOCKS = [[1], [8, 4, 8], [16, 16], [1]]                  # one ST block
KO = N_HIS - (len(BLOCKS) - 3) * 2 * (KT - 1)             # = 4 (> 1 -> OutputBlock)
LN_EPS = 1e-5                       # nn.LayerNorm default eps

T1 = N_HIS                          # time extent entering the ST block
T2 = T1 - (KT - 1)                  # after temporal conv 1          (= 6)
T3 = T2 - (KT - 1)                  # after temporal conv 2          (= 4)
T4 = T3 - (KO - 1)                  # after the output temporal conv (= 1)
assert KO > 1 and T4 == 1
BN = BATCH * N_VERTEX               # lanes per time step (batch folded into lanes)
SLAB_W = 256                        # lane width of the packed weight slab


# =============================================================================
# fused Pallas kernel
# =============================================================================
def _build_kernel(offs):
    """Builds the fused kernel; `offs[name] = (row, col, nrows, ncols)` into the slab."""
    c0, c1, c2 = BLOCKS[1]
    co0, co1 = BLOCKS[-2]
    f32 = jnp.float32

    def kernel(x_ref, w_ref, o_ref):
        def W(name):
            r, c, nr, nc = offs[name]
            return w_ref[r:r + nr, c:c + nc]

        def dot(a, b):
            return jnp.dot(a, b, preferred_element_type=f32)

        def sigmoid(v):                                   # EUP reciprocal path
            return pl.reciprocal(1.0 + jnp.exp(-v), approx=True)

        def elu(v):
            return jnp.where(v > 0.0, v, jnp.exp(jnp.minimum(v, 0.0)) - 1.0)

        def temporal_conv_glu(v, t_in, kt, wname, bname, c_out):
            """Causal GLU conv on a (c_in, t_in*BN) slab -> (c_out, (t_in-kt+1)*BN).

            Per tap: one fused matmul producing P|Q; the Align zero-channel-pad
            residual is already folded into the last tap's P rows at pack time.
            """
            c_in = v.shape[0]
            l_out = (t_in - kt + 1) * BN
            r0, col0, _, _ = offs[wname]                  # (kt*2*c_out, c_in) taps stacked on rows
            acc = None
            for k in range(kt):
                wk = w_ref[r0 + k * 2 * c_out:r0 + (k + 1) * 2 * c_out, col0:col0 + c_in]
                tap = v[:, k * BN:k * BN + l_out]
                term = wk * tap if c_in == 1 else dot(wk, tap)   # K==1 -> outer product
                acc = term if acc is None else acc + term
            acc = acc + W(bname)                          # (2*c_out, 1) broadcast
            return acc[:c_out] * sigmoid(acc[c_out:])     # GLU gate (residual already in P)

        def layer_norm(v, avgname, gname, bname):
            """LayerNorm over each (n_vertex, channels) group of a (C, T*BN) slab."""
            avg = W(avgname)                              # kron(I_{T*B}, 11^T) / (N*C)
            s = jnp.sum(v, axis=0, keepdims=True)         # (1, L) channel sums
            mean = dot(s, avg)                            # group mean, broadcast within group
            vc = v - mean
            var = dot(jnp.sum(vc * vc, axis=0, keepdims=True), avg)
            return vc * lax.rsqrt(var + LN_EPS) * W(gname) + W(bname)

        # ------------------------------ ST block -----------------------------
        x = x_ref[...]                                                  # (c_in, T1*BN)
        h = temporal_conv_glu(x, T1, KT, "tc1_w", "tc1_b", c0)          # (c0, T2*BN)

        # Cheb graph conv: 1x1 align (c0 -> c1) -> Chebyshev recurrence -> +res -> ReLU
        x0 = dot(W("gca_w"), h) + W("gca_b")                            # (c1, T2*BN)
        gso_t = W("gso_t")                                              # kron(I_{T2*B}, gso^T)
        acc = dot(W("cheb_w0"), x0)
        if KS > 1:
            x_prev, x_cur = x0, dot(x0, gso_t)
            acc = acc + dot(W("cheb_w1"), x_cur)
            for k in range(2, KS):
                x_prev, x_cur = x_cur, 2.0 * dot(x_cur, gso_t) - x_prev
                acc = acc + dot(W("cheb_w" + str(k)), x_cur)
        h = jnp.maximum(acc + W("cheb_b") + x0, 0.0)                    # (c1, T2*BN)

        h = temporal_conv_glu(h, T2, KT, "tc2_w", "tc2_b", c2)          # (c2, T3*BN)
        h = layer_norm(h, "ln1_avg", "ln1_g", "ln1_b")
        # dropout: identity (inference)

        # ---------------------------- output block ---------------------------
        h = temporal_conv_glu(h, T3, KO, "oc_w", "oc_b", co0)           # (co0, T4*BN)
        h = layer_norm(h, "oln_avg", "oln_g", "oln_b")
        h = jnp.maximum(dot(W("fc1_w"), h) + W("fc1_b"), 0.0)           # (co1, T4*BN)
        feat = dot(W("fc2_w"), h) + W("fc2_b")                          # (1, T4*BN)

        # ----------------------- expression_proj_miRNA -----------------------
        g = elu(W("mp1_w") * feat + W("mp1_b"))                         # (64, BN) outer product
        g = elu(dot(W("mp2_w"), g) + W("mp2_b"))                        # (32, BN)
        g = elu(dot(W("mp3_w"), g) + W("mp3_b"))                        # (16, BN)
        base = dot(W("mp4_w"), g) + W("mp4_b")                          # (1, BN)

        # Temporal attention: softmax over the output time axis; the output
        # temporal conv spans every remaining step (T4 == 1), so the singleton
        # softmax is exactly 1 and weighted_output == base_output (dead math
        # removed per the performance review).
        o_ref[...] = base.astype(o_ref.dtype)

    return kernel


def make_forward(offs):
    """Returns a jitted forward(x_nchw, weight_slab) matching the PyTorch module I/O."""
    kernel = _build_kernel(offs)

    def forward(x_nchw, wslab):
        b, c_in, t, n = x_nchw.shape
        # (B, C, T, N) -> (C, T, B, N) -> (C, T*B*N): lanes ordered (time, batch, node)
        x_slab = jnp.transpose(x_nchw, (1, 2, 0, 3)).reshape(c_in, t * b * n)
        out = pl.pallas_call(                      # no grid: single invocation, whole arrays in VMEM
            kernel,
            out_shape=jax.ShapeDtypeStruct((1, b * n), jnp.float32),
        )(x_slab, wslab)
        # lanes are (batch, node) with node fastest; NCHW output: (B, c_end=1, T_out=1, N)
        return out.reshape(b, n)[:, None, None, :]

    return jax.jit(forward)


# =============================================================================
# parameters (PyTorch-native layouts) and host-side packing into one slab
# =============================================================================
def init_params(key):
    keys = jax.random.split(key, 32)
    ki = iter(keys)

    def w_init(shape, scale=0.1):
        return scale * jax.random.normal(next(ki), shape, dtype=jnp.float32)

    c_in0 = BLOCKS[0][-1]
    c0, c1, c2 = BLOCKS[1]
    co0, co1 = BLOCKS[-2]
    c_end = BLOCKS[-1][0]
    p = {}
    # ST block: GLU temporal conv -> Cheb graph conv (+res, ReLU) -> GLU temporal conv -> LayerNorm
    p["tc1_w"] = w_init((2 * c0, c_in0, KT, 1)); p["tc1_b"] = w_init((2 * c0,), 0.01)
    p["gc_align_w"] = w_init((c1, c0, 1, 1));    p["gc_align_b"] = w_init((c1,), 0.01)
    p["cheb_w"] = w_init((KS, c1, c1));          p["cheb_b"] = w_init((c1,), 0.01)
    p["tc2_w"] = w_init((2 * c2, c1, KT, 1));    p["tc2_b"] = w_init((2 * c2,), 0.01)
    p["ln1_g"] = jnp.ones((N_VERTEX, c2), jnp.float32)
    p["ln1_b"] = jnp.zeros((N_VERTEX, c2), jnp.float32)
    # Output block: GLU temporal conv -> LayerNorm -> FC -> ReLU -> FC
    p["oc_w"] = w_init((2 * co0, c2, KO, 1));    p["oc_b"] = w_init((2 * co0,), 0.01)
    p["oln_g"] = jnp.ones((N_VERTEX, co0), jnp.float32)
    p["oln_b"] = jnp.zeros((N_VERTEX, co0), jnp.float32)
    p["fc1_w"] = w_init((co1, co0));             p["fc1_b"] = w_init((co1,), 0.01)   # torch (out, in)
    p["fc2_w"] = w_init((c_end, co1));           p["fc2_b"] = w_init((c_end,), 0.01)
    # expression_proj_miRNA: c_end -> 64 -> 32 -> 16 -> 1 (ELU between, dropout = identity)
    p["mp1_w"] = w_init((64, c_end));            p["mp1_b"] = w_init((64,), 0.01)
    p["mp2_w"] = w_init((32, 64));               p["mp2_b"] = w_init((32,), 0.01)
    p["mp3_w"] = w_init((16, 32));               p["mp3_b"] = w_init((16,), 0.01)
    p["mp4_w"] = w_init((1, 16));                p["mp4_b"] = w_init((1,), 0.01)
    # temporal_attention params kept for fidelity; provably a no-op at inference
    # (output block collapses time to one step -> softmax over time == 1).
    p["ta1_w"] = w_init((c_end, c_end));         p["ta1_b"] = w_init((c_end,), 0.01)
    p["ta2_w"] = w_init((1, c_end));             p["ta2_b"] = w_init((1,), 0.01)
    # graph shift operator (symmetric, small spectral radius)
    a = jax.random.normal(next(ki), (N_VERTEX, N_VERTEX), dtype=jnp.float32)
    a = 0.5 * (a + a.T)
    p["gso"] = a / (2.0 * jnp.sqrt(jnp.float32(N_VERTEX)))
    return p


class _SlabBuilder:
    """Packs many small f32 weights into one (rows, SLAB_W) slab: one DMA total.

    Row offsets are 8-aligned (sublane tile) so every in-kernel static slice
    starts on a tile boundary; related tensors share rows (side-by-side columns)
    to keep the slab, and hence the single weight DMA, small.
    """

    def __init__(self, width=SLAB_W):
        self.width = width
        self.blocks = []
        self.offs = {}
        self.nrows = 0

    def add_group(self, items):
        items = [(n, np.asarray(a, np.float32)) for n, a in items]
        rows = max(a.shape[0] for _, a in items)
        rows = -(-rows // 8) * 8
        block = np.zeros((rows, self.width), np.float32)
        col = 0
        for name, a in items:
            r, c = a.shape
            assert col + c <= self.width, (name, col, c)
            block[:r, col:col + c] = a
            self.offs[name] = (self.nrows, col, r, c)
            col += c
        self.blocks.append(block)
        self.nrows += rows

    def add(self, name, arr):
        self.add_group([(name, arr)])

    def finish(self):
        return jnp.asarray(np.concatenate(self.blocks, axis=0)), self.offs


def pack_params(p):
    """Repack PyTorch-layout weights into the (C, T*B*N)-layout slab the kernel uses."""
    c_in0 = BLOCKS[0][-1]
    c0, c1, c2 = BLOCKS[1]
    co0, co1 = BLOCKS[-2]
    c_end = BLOCKS[-1][0]
    f32 = np.float32

    def conv_pq(wt, bias, kt, c_in, c_out):
        # torch CausalConv2d weight (2*c_out, c_in, kt, 1) -> taps stacked on rows
        # (kt*2*c_out, c_in).  The Align zero-channel-pad residual (c_in <= c_out)
        # is folded as +I into the P half of the LAST tap (its input time step is
        # exactly the residual's time step), so the kernel needs no extra add.
        w = np.asarray(wt, f32)[:, :, :, 0]                         # (2c_out, c_in, kt)
        taps = np.ascontiguousarray(np.transpose(w, (2, 0, 1)))     # (kt, 2c_out, c_in)
        assert c_in <= c_out
        taps[kt - 1, :c_in, :c_in] += np.eye(c_in, dtype=f32)
        return taps.reshape(kt * 2 * c_out, c_in), np.asarray(bias, f32).reshape(2 * c_out, 1)

    def ln_pack(gamma, beta, t_steps, c):
        # group-averaging matrix over each (n_vertex, c) group + lane-tiled affine params
        groups = t_steps * BATCH
        avg = np.kron(np.eye(groups, dtype=f32),
                      np.ones((N_VERTEX, N_VERTEX), f32)) / float(N_VERTEX * c)
        g = np.tile(np.asarray(gamma, f32).T, (1, groups))          # (c, groups*N)
        b = np.tile(np.asarray(beta, f32).T, (1, groups))
        return avg, g, b

    s = _SlabBuilder()

    tc1_w, tc1_b = conv_pq(p["tc1_w"], p["tc1_b"], KT, c_in0, c0)
    s.add_group([("tc1_w", tc1_w), ("tc1_b", tc1_b)])

    s.add_group([("gca_w", np.asarray(p["gc_align_w"], f32)[:, :, 0, 0]),     # (c1, c0)
                 ("gca_b", np.asarray(p["gc_align_b"], f32).reshape(c1, 1))])

    s.add("gso_t", np.kron(np.eye(T2 * BATCH, dtype=f32), np.asarray(p["gso"], f32).T))

    cheb = np.asarray(p["cheb_w"], f32)                             # (Ks, c_in, c_out)
    s.add_group([("cheb_w" + str(k), cheb[k].T) for k in range(KS)]
                + [("cheb_b", np.asarray(p["cheb_b"], f32).reshape(c1, 1))])

    tc2_w, tc2_b = conv_pq(p["tc2_w"], p["tc2_b"], KT, c1, c2)
    s.add_group([("tc2_w", tc2_w), ("tc2_b", tc2_b)])

    ln1_avg, ln1_g, ln1_b = ln_pack(p["ln1_g"], p["ln1_b"], T3, c2)
    s.add("ln1_avg", ln1_avg)
    s.add_group([("ln1_g", ln1_g), ("ln1_b", ln1_b)])

    oc_w, oc_b = conv_pq(p["oc_w"], p["oc_b"], KO, c2, co0)
    s.add_group([("oc_w", oc_w), ("oc_b", oc_b)])

    oln_avg, oln_g, oln_b = ln_pack(p["oln_g"], p["oln_b"], T4, co0)
    s.add_group([("oln_avg", oln_avg), ("oln_g", oln_g), ("oln_b", oln_b)])

    s.add_group([("fc1_w", np.asarray(p["fc1_w"], f32)),            # torch (out,in) applies as W @ x
                 ("fc1_b", np.asarray(p["fc1_b"], f32).reshape(co1, 1)),
                 ("fc2_w", np.asarray(p["fc2_w"], f32)),
                 ("fc2_b", np.asarray(p["fc2_b"], f32).reshape(c_end, 1))])

    s.add_group([("mp1_w", np.asarray(p["mp1_w"], f32)),            # (64, c_end=1) column
                 ("mp1_b", np.asarray(p["mp1_b"], f32).reshape(64, 1))])
    s.add_group([("mp2_w", np.asarray(p["mp2_w"], f32)),
                 ("mp2_b", np.asarray(p["mp2_b"], f32).reshape(32, 1)),
                 ("mp3_w", np.asarray(p["mp3_w"], f32)),
                 ("mp3_b", np.asarray(p["mp3_b"], f32).reshape(16, 1)),
                 ("mp4_w", np.asarray(p["mp4_w"], f32)),
                 ("mp4_b", np.asarray(p["mp4_b"], f32).reshape(1, 1))])

    # temporal_attention weights are intentionally not packed: its softmax runs
    # over the singleton output time axis (T4 == 1), so the attention weight is
    # exactly 1 and the whole branch is a no-op at inference.
    return s.finish()


# =============================================================================
# run
# =============================================================================
if __name__ == "__main__":
    key = jax.random.PRNGKey(0)
    pkey, xkey = jax.random.split(key)
    params = init_params(pkey)
    wslab, offs = pack_params(params)            # host-side repack, done once

    # NCHW input: (batch, in_channels = blocks[0][-1], n_his, n_vertex)
    x = jax.random.normal(xkey, (BATCH, BLOCKS[0][-1], N_HIS, N_VERTEX),
                          dtype=jnp.float32)

    fwd = make_forward(offs)
    out = jax.block_until_ready(fwd(x, wslab))

    assert out.shape == (BATCH, 1, 1, N_VERTEX), out.shape
    assert bool(jnp.all(jnp.isfinite(out)))
    print("KERNEL_OK")
</pallas_src>

<mosaic_0001>
module attributes {stable_mosaic.version = 11 : i64} {
  func.func @kernel(%arg0: memref<1x256xf32, #tpu.memory_space<vmem>>, %arg1: memref<712x256xf32, #tpu.memory_space<vmem>>, %arg2: memref<1x32xf32, #tpu.memory_space<vmem>>) attributes {dimension_semantics = [], scalar_prefetch = 0 : i64, scratch_operands = 0 : i64, tpu.core_type = #tpu.core_type<tc>} {
    %c0 = arith.constant 0 : index
    %c0_0 = arith.constant 0 : index
    %0 = vector.load %arg0[%c0, %c0_0] : memref<1x256xf32, #tpu.memory_space<vmem>>, vector<1x256xf32>
    %c0_1 = arith.constant 0 : index
    %c0_2 = arith.constant 0 : index
    %1 = vector.load %arg1[%c0_1, %c0_2] : memref<712x256xf32, #tpu.memory_space<vmem>>, vector<16x1xf32>
    %2 = vector.extract_strided_slice %0 {offsets = [0, 0], sizes = [1, 192], strides = [1, 1]} : vector<1x256xf32> to vector<1x192xf32>
    %3 = vector.broadcast %1 : vector<16x1xf32> to vector<16x192xf32>
    %4 = vector.broadcast %2 : vector<1x192xf32> to vector<16x192xf32>
    %5 = arith.mulf %3, %4 : vector<16x192xf32>
    %c16 = arith.constant 16 : index
    %c0_3 = arith.constant 0 : index
    %6 = vector.load %arg1[%c16, %c0_3] : memref<712x256xf32, #tpu.memory_space<vmem>>, vector<16x1xf32>
    %7 = vector.extract_strided_slice %0 {offsets = [0, 32], sizes = [1, 192], strides = [1, 1]} : vector<1x256xf32> to vector<1x192xf32>
    %8 = vector.broadcast %6 : vector<16x1xf32> to vector<16x192xf32>
    %9 = vector.broadcast %7 : vector<1x192xf32> to vector<16x192xf32>
    %10 = arith.mulf %8, %9 : vector<16x192xf32>
    %11 = arith.addf %5, %10 : vector<16x192xf32>
    %c32 = arith.constant 32 : index
    %c0_4 = arith.constant 0 : index
    %12 = vector.load %arg1[%c32, %c0_4] : memref<712x256xf32, #tpu.memory_space<vmem>>, vector<16x1xf32>
    %13 = vector.extract_strided_slice %0 {offsets = [0, 64], sizes = [1, 192], strides = [1, 1]} : vector<1x256xf32> to vector<1x192xf32>
    %14 = vector.broadcast %12 : vector<16x1xf32> to vector<16x192xf32>
    %15 = vector.broadcast %13 : vector<1x192xf32> to vector<16x192xf32>
    %16 = arith.mulf %14, %15 : vector<16x192xf32>
    %17 = arith.addf %11, %16 : vector<16x192xf32>
    %c0_5 = arith.constant 0 : index
    %c1 = arith.constant 1 : index
    %18 = vector.load %arg1[%c0_5, %c1] : memref<712x256xf32, #tpu.memory_space<vmem>>, vector<16x1xf32>
    %19 = vector.broadcast %18 : vector<16x1xf32> to vector<16x192xf32>
    %20 = arith.addf %17, %19 : vector<16x192xf32>
    %21 = vector.extract_strided_slice %20 {offsets = [0, 0], sizes = [8, 192], strides = [1, 1]} : vector<16x192xf32> to vector<8x192xf32>
    %22 = vector.extract_strided_slice %20 {offsets = [8, 0], sizes = [8, 192], strides = [1, 1]} : vector<16x192xf32> to vector<8x192xf32>
    %cst = arith.constant 0.000000e+00 : f32
    %23 = vector.broadcast %cst : f32 to vector<8x192xf32>
    %24 = arith.subf %23, %22 : vector<8x192xf32>
    %25 = math.exp %24 : vector<8x192xf32>
    %cst_6 = arith.constant 1.000000e+00 : f32
    %26 = vector.broadcast %cst_6 : f32 to vector<8x192xf32>
    %27 = arith.addf %26, %25 : vector<8x192xf32>
    %28 = tpu.reciprocal %27 {approx = true} : vector<8x192xf32> -> vector<8x192xf32>
    %29 = arith.mulf %21, %28 : vector<8x192xf32>
    %c48 = arith.constant 48 : index
    %c0_7 = arith.constant 0 : index
    %30 = vector.load %arg1[%c48, %c0_7] : memref<712x256xf32, #tpu.memory_space<vmem>>, vector<4x8xf32>
    %cst_8 = arith.constant dense<0.000000e+00> : vector<4x192xf32>
    %31 = tpu.matmul %30, %29, %cst_8 {dimension_numbers = #tpu.dot_dimension_numbers<[1], [0], [0], [1], [0, 0, 1, 1], [], []>} : vector<4x8xf32>, vector<8x192xf32>, vector<4x192xf32> -> vector<4x192xf32>
    %c48_9 = arith.constant 48 : index
    %c8 = arith.constant 8 : index
    %32 = vector.load %arg1[%c48_9, %c8] : memref<712x256xf32, #tpu.memory_space<vmem>>, vector<4x1xf32>
    %33 = vector.broadcast %32 : vector<4x1xf32> to vector<4x192xf32>
    %34 = arith.addf %31, %33 : vector<4x192xf32>
    %c56 = arith.constant 56 : index
    %c0_10 = arith.constant 0 : index
    %35 = vector.load %arg1[%c56, %c0_10] : memref<712x256xf32, #tpu.memory_space<vmem>>, vector<192x192xf32>
    %c248 = arith.constant 248 : index
    %c0_11 = arith.constant 0 : index
    %36 = vector.load %arg1[%c248, %c0_11] : memref<712x256xf32, #tpu.memory_space<vmem>>, vector<4x4xf32>
    %cst_12 = arith.constant dense<0.000000e+00> : vector<4x192xf32>
    %37 = tpu.matmul %36, %34, %cst_12 {dimension_numbers = #tpu.dot_dimension_numbers<[1], [0], [0], [1], [0, 0, 1, 1], [], []>} : vector<4x4xf32>, vector<4x192xf32>, vector<4x192xf32> -> vector<4x192xf32>
    %cst_13 = arith.constant dense<0.000000e+00> : vector<4x192xf32>
    %38 = tpu.matmul %34, %35, %cst_13 {dimension_numbers = #tpu.dot_dimension_numbers<[1], [0], [0], [1], [0, 0, 1, 1], [], []>} : vector<4x192xf32>, vector<192x192xf32>, vector<4x192xf32> -> vector<4x192xf32>
    %c248_14 = arith.constant 248 : index
    %c4 = arith.constant 4 : index
    %39 = vector.load %arg1[%c248_14, %c4] : memref<712x256xf32, #tpu.memory_space<vmem>>, vector<4x4xf32>
    %cst_15 = arith.constant dense<0.000000e+00> : vector<4x192xf32>
    %40 = tpu.matmul %39, %38, %cst_15 {dimension_numbers = #tpu.dot_dimension_numbers<[1], [0], [0], [1], [0, 0, 1, 1], [], []>} : vector<4x4xf32>, vector<4x192xf32>, vector<4x192xf32> -> vector<4x192xf32>
    %41 = arith.addf %37, %40 : vector<4x192xf32>
    %cst_16 = arith.constant dense<0.000000e+00> : vector<4x192xf32>
    %42 = tpu.matmul %38, %35, %cst_16 {dimension_numbers = #tpu.dot_dimension_numbers<[1], [0], [0], [1], [0, 0, 1, 1], [], []>} : vector<4x192xf32>, vector<192x192xf32>, vector<4x192xf32> -> vector<4x192xf32>
    %cst_17 = arith.constant 2.000000e+00 : f32
    %43 = vector.broadcast %cst_17 : f32 to vector<4x192xf32>
    %44 = arith.mulf %43, %42 : vector<4x192xf32>
    %45 = arith.subf %44, %34 : vector<4x192xf32>
    %c248_18 = arith.constant 248 : index
    %c8_19 = arith.constant 8 : index
    %46 = vector.load %arg1[%c248_18, %c8_19] : memref<712x256xf32, #tpu.memory_space<vmem>>, vector<4x4xf32>
    %cst_20 = arith.constant dense<0.000000e+00> : vector<4x192xf32>
    %47 = tpu.matmul %46, %45, %cst_20 {dimension_numbers = #tpu.dot_dimension_numbers<[1], [0], [0], [1], [0, 0, 1, 1], [], []>} : vector<4x4xf32>, vector<4x192xf32>, vector<4x192xf32> -> vector<4x192xf32>
    %48 = arith.addf %41, %47 : vector<4x192xf32>
    %c248_21 = arith.constant 248 : index
    %c12 = arith.constant 12 : index
    %49 = vector.load %arg1[%c248_21, %c12] : memref<712x256xf32, #tpu.memory_space<vmem>>, vector<4x1xf32>
    %50 = vector.broadcast %49 : vector<4x1xf32> to vector<4x192xf32>
    %51 = arith.addf %48, %50 : vector<4x192xf32>
    %52 = arith.addf %51, %34 : vector<4x192xf32>
    %cst_22 = arith.constant 0.000000e+00 : f32
    %53 = vector.broadcast %cst_22 : f32 to vector<4x192xf32>
    %54 = arith.maximumf %52, %53 : vector<4x192xf32>
    %c256 = arith.constant 256 : index
    %c0_23 = arith.constant 0 : index
    %55 = vector.load %arg1[%c256, %c0_23] : memref<712x256xf32, #tpu.memory_space<vmem>>, vector<16x4xf32>
    %56 = vector.extract_strided_slice %54 {offsets = [0, 0], sizes = [4, 128], strides = [1, 1]} : vector<4x192xf32> to vector<4x128xf32>
    %cst_24 = arith.constant dense<0.000000e+00> : vector<16x128xf32>
    %57 = tpu.matmul %55, %56, %cst_24 {dimension_numbers = #tpu.dot_dimension_numbers<[1], [0], [0], [1], [0, 0, 1, 1], [], []>} : vector<16x4xf32>, vector<4x128xf32>, vector<16x128xf32> -> vector<16x128xf32>
    %c272 = arith.constant 272 : index
    %c0_25 = arith.constant 0 : index
    %58 = vector.load %arg1[%c272, %c0_25] : memref<712x256xf32, #tpu.memory_space<vmem>>, vector<16x4xf32>
    %59 = vector.extract_strided_slice %54 {offsets = [0, 32], sizes = [4, 128], strides = [1, 1]} : vector<4x192xf32> to vector<4x128xf32>
    %cst_26 = arith.constant dense<0.000000e+00> : vector<16x128xf32>
    %60 = tpu.matmul %58, %59, %cst_26 {dimension_numbers = #tpu.dot_dimension_numbers<[1], [0], [0], [1], [0, 0, 1, 1], [], []>} : vector<16x4xf32>, vector<4x128xf32>, vector<16x128xf32> -> vector<16x128xf32>
    %61 = arith.addf %57, %60 : vector<16x128xf32>
    %c288 = arith.constant 288 : index
    %c0_27 = arith.constant 0 : index
    %62 = vector.load %arg1[%c288, %c0_27] : memref<712x256xf32, #tpu.memory_space<vmem>>, vector<16x4xf32>
    %63 = vector.extract_strided_slice %54 {offsets = [0, 64], sizes = [4, 128], strides = [1, 1]} : vector<4x192xf32> to vector<4x128xf32>
    %cst_28 = arith.constant dense<0.000000e+00> : vector<16x128xf32>
    %64 = tpu.matmul %62, %63, %cst_28 {dimension_numbers = #tpu.dot_dimension_numbers<[1], [0], [0], [1], [0, 0, 1, 1], [], []>} : vector<16x4xf32>, vector<4x128xf32>, vector<16x128xf32> -> vector<16x128xf32>
    %65 = arith.addf %61, %64 : vector<16x128xf32>
    %c256_29 = arith.constant 256 : index
    %c4_30 = arith.constant 4 : index
    %66 = vector.load %arg1[%c256_29, %c4_30] : memref<712x256xf32, #tpu.memory_space<vmem>>, vector<16x1xf32>
    %67 = vector.broadcast %66 : vector<16x1xf32> to vector<16x128xf32>
    %68 = arith.addf %65, %67 : vector<16x128xf32>
    %69 = vector.extract_strided_slice %68 {offsets = [0, 0], sizes = [8, 128], strides = [1, 1]} : vector<16x128xf32> to vector<8x128xf32>
    %70 = vector.extract_strided_slice %68 {offsets = [8, 0], sizes = [8, 128], strides = [1, 1]} : vector<16x128xf32> to vector<8x128xf32>
    %cst_31 = arith.constant 0.000000e+00 : f32
    %71 = vector.broadcast %cst_31 : f32 to vector<8x128xf32>
    %72 = arith.subf %71, %70 : vector<8x128xf32>
    %73 = math.exp %72 : vector<8x128xf32>
    %cst_32 = arith.constant 1.000000e+00 : f32
    %74 = vector.broadcast %cst_32 : f32 to vector<8x128xf32>
    %75 = arith.addf %74, %73 : vector<8x128xf32>
    %76 = tpu.reciprocal %75 {approx = true} : vector<8x128xf32> -> vector<8x128xf32>
    %77 = arith.mulf %69, %76 : vector<8x128xf32>
    %c304 = arith.constant 304 : index
    %c0_33 = arith.constant 0 : index
    %78 = vector.load %arg1[%c304, %c0_33] : memref<712x256xf32, #tpu.memory_space<vmem>>, vector<128x128xf32>
    %cst_34 = arith.constant dense<0.000000e+00> : vector<128xf32>
    %79 = vector.multi_reduction <add>, %77, %cst_34 [0] : vector<8x128xf32> to vector<128xf32>
    %80 = vector.shape_cast %79 : vector<128xf32> to vector<1x128xf32>
    %cst_35 = arith.constant dense<0.000000e+00> : vector<1x128xf32>
    %81 = tpu.matmul %80, %78, %cst_35 {dimension_numbers = #tpu.dot_dimension_numbers<[1], [0], [0], [1], [0, 0, 1, 1], [], []>} : vector<1x128xf32>, vector<128x128xf32>, vector<1x128xf32> -> vector<1x128xf32>
    %82 = vector.broadcast %81 : vector<1x128xf32> to vector<8x128xf32>
    %83 = arith.subf %77, %82 : vector<8x128xf32>
    %84 = arith.mulf %83, %83 : vector<8x128xf32>
    %cst_36 = arith.constant dense<0.000000e+00> : vector<128xf32>
    %85 = vector.multi_reduction <add>, %84, %cst_36 [0] : vector<8x128xf32> to vector<128xf32>
    %86 = vector.shape_cast %85 : vector<128xf32> to vector<1x128xf32>
    %cst_37 = arith.constant dense<0.000000e+00> : vector<1x128xf32>
    %87 = tpu.matmul %86, %78, %cst_37 {dimension_numbers = #tpu.dot_dimension_numbers<[1], [0], [0], [1], [0, 0, 1, 1], [], []>} : vector<1x128xf32>, vector<128x128xf32>, vector<1x128xf32> -> vector<1x128xf32>
    %cst_38 = arith.constant 9.99999974E-6 : f32
    %88 = vector.broadcast %cst_38 : f32 to vector<1x128xf32>
    %89 = arith.addf %87, %88 : vector<1x128xf32>
    %90 = math.rsqrt %89 : vector<1x128xf32>
    %91 = vector.broadcast %90 : vector<1x128xf32> to vector<8x128xf32>
    %92 = arith.mulf %83, %91 : vector<8x128xf32>
    %c432 = arith.constant 432 : index
    %c0_39 = arith.constant 0 : index
    %93 = vector.load %arg1[%c432, %c0_39] : memref<712x256xf32, #tpu.memory_space<vmem>>, vector<8x128xf32>
    %94 = arith.mulf %92, %93 : vector<8x128xf32>
    %c432_40 = arith.constant 432 : index
    %c128 = arith.constant 128 : index
    %95 = vector.load %arg1[%c432_40, %c128] : memref<712x256xf32, #tpu.memory_space<vmem>>, vector<8x128xf32>
    %96 = arith.addf %94, %95 : vector<8x128xf32>
    %c440 = arith.constant 440 : index
    %c0_41 = arith.constant 0 : index
    %97 = vector.load %arg1[%c440, %c0_41] : memref<712x256xf32, #tpu.memory_space<vmem>>, vector<32x8xf32>
    %98 = vector.extract_strided_slice %96 {offsets = [0, 0], sizes = [8, 32], strides = [1, 1]} : vector<8x128xf32> to vector<8x32xf32>
    %cst_42 = arith.constant dense<0.000000e+00> : vector<32x32xf32>
    %99 = tpu.matmul %97, %98, %cst_42 {dimension_numbers = #tpu.dot_dimension_numbers<[1], [0], [0], [1], [0, 0, 1, 1], [], []>} : vector<32x8xf32>, vector<8x32xf32>, vector<32x32xf32> -> vector<32x32xf32>
    %c472 = arith.constant 472 : index
    %c0_43 = arith.constant 0 : index
    %100 = vector.load %arg1[%c472, %c0_43] : memref<712x256xf32, #tpu.memory_space<vmem>>, vector<32x8xf32>
    %101 = vector.extract_strided_slice %96 {offsets = [0, 32], sizes = [8, 32], strides = [1, 1]} : vector<8x128xf32> to vector<8x32xf32>
    %cst_44 = arith.constant dense<0.000000e+00> : vector<32x32xf32>
    %102 = tpu.matmul %100, %101, %cst_44 {dimension_numbers = #tpu.dot_dimension_numbers<[1], [0], [0], [1], [0, 0, 1, 1], [], []>} : vector<32x8xf32>, vector<8x32xf32>, vector<32x32xf32> -> vector<32x32xf32>
    %103 = arith.addf %99, %102 : vector<32x32xf32>
    %c504 = arith.constant 504 : index
    %c0_45 = arith.constant 0 : index
    %104 = vector.load %arg1[%c504, %c0_45] : memref<712x256xf32, #tpu.memory_space<vmem>>, vector<32x8xf32>
    %105 = vector.extract_strided_slice %96 {offsets = [0, 64], sizes = [8, 32], strides = [1, 1]} : vector<8x128xf32> to vector<8x32xf32>
    %cst_46 = arith.constant dense<0.000000e+00> : vector<32x32xf32>
    %106 = tpu.matmul %104, %105, %cst_46 {dimension_numbers = #tpu.dot_dimension_numbers<[1], [0], [0], [1], [0, 0, 1, 1], [], []>} : vector<32x8xf32>, vector<8x32xf32>, vector<32x32xf32> -> vector<32x32xf32>
    %107 = arith.addf %103, %106 : vector<32x32xf32>
    %c536 = arith.constant 536 : index
    %c0_47 = arith.constant 0 : index
    %108 = vector.load %arg1[%c536, %c0_47] : memref<712x256xf32, #tpu.memory_space<vmem>>, vector<32x8xf32>
    %109 = vector.extract_strided_slice %96 {offsets = [0, 96], sizes = [8, 32], strides = [1, 1]} : vector<8x128xf32> to vector<8x32xf32>
    %cst_48 = arith.constant dense<0.000000e+00> : vector<32x32xf32>
    %110 = tpu.matmul %108, %109, %cst_48 {dimension_numbers = #tpu.dot_dimension_numbers<[1], [0], [0], [1], [0, 0, 1, 1], [], []>} : vector<32x8xf32>, vector<8x32xf32>, vector<32x32xf32> -> vector<32x32xf32>
    %111 = arith.addf %107, %110 : vector<32x32xf32>
    %c440_49 = arith.constant 440 : index
    %c8_50 = arith.constant 8 : index
    %112 = vector.load %arg1[%c440_49, %c8_50] : memref<712x256xf32, #tpu.memory_space<vmem>>, vector<32x1xf32>
    %113 = vector.broadcast %112 : vector<32x1xf32> to vector<32x32xf32>
    %114 = arith.addf %111, %113 : vector<32x32xf32>
    %115 = vector.extract_strided_slice %114 {offsets = [0, 0], sizes = [16, 32], strides = [1, 1]} : vector<32x32xf32> to vector<16x32xf32>
    %116 = vector.extract_strided_slice %114 {offsets = [16, 0], sizes = [16, 32], strides = [1, 1]} : vector<32x32xf32> to vector<16x32xf32>
    %cst_51 = arith.constant 0.000000e+00 : f32
    %117 = vector.broadcast %cst_51 : f32 to vector<16x32xf32>
    %118 = arith.subf %117, %116 : vector<16x32xf32>
    %119 = math.exp %118 : vector<16x32xf32>
    %cst_52 = arith.constant 1.000000e+00 : f32
    %120 = vector.broadcast %cst_52 : f32 to vector<16x32xf32>
    %121 = arith.addf %120, %119 : vector<16x32xf32>
    %122 = tpu.reciprocal %121 {approx = true} : vector<16x32xf32> -> vector<16x32xf32>
    %123 = arith.mulf %115, %122 : vector<16x32xf32>
    %c568 = arith.constant 568 : index
    %c0_53 = arith.constant 0 : index
    %124 = vector.load %arg1[%c568, %c0_53] : memref<712x256xf32, #tpu.memory_space<vmem>>, vector<32x32xf32>
    %cst_54 = arith.constant dense<0.000000e+00> : vector<32xf32>
    %125 = vector.multi_reduction <add>, %123, %cst_54 [0] : vector<16x32xf32> to vector<32xf32>
    %126 = vector.shape_cast %125 : vector<32xf32> to vector<1x32xf32>
    %cst_55 = arith.constant dense<0.000000e+00> : vector<1x32xf32>
    %127 = tpu.matmul %126, %124, %cst_55 {dimension_numbers = #tpu.dot_dimension_numbers<[1], [0], [0], [1], [0, 0, 1, 1], [], []>} : vector<1x32xf32>, vector<32x32xf32>, vector<1x32xf32> -> vector<1x32xf32>
    %128 = vector.broadcast %127 : vector<1x32xf32> to vector<16x32xf32>
    %129 = arith.subf %123, %128 : vector<16x32xf32>
    %130 = arith.mulf %129, %129 : vector<16x32xf32>
    %cst_56 = arith.constant dense<0.000000e+00> : vector<32xf32>
    %131 = vector.multi_reduction <add>, %130, %cst_56 [0] : vector<16x32xf32> to vector<32xf32>
    %132 = vector.shape_cast %131 : vector<32xf32> to vector<1x32xf32>
    %cst_57 = arith.constant dense<0.000000e+00> : vector<1x32xf32>
    %133 = tpu.matmul %132, %124, %cst_57 {dimension_numbers = #tpu.dot_dimension_numbers<[1], [0], [0], [1], [0, 0, 1, 1], [], []>} : vector<1x32xf32>, vector<32x32xf32>, vector<1x32xf32> -> vector<1x32xf32>
    %cst_58 = arith.constant 9.99999974E-6 : f32
    %134 = vector.broadcast %cst_58 : f32 to vector<1x32xf32>
    %135 = arith.addf %133, %134 : vector<1x32xf32>
    %136 = math.rsqrt %135 : vector<1x32xf32>
    %137 = vector.broadcast %136 : vector<1x32xf32> to vector<16x32xf32>
    %138 = arith.mulf %129, %137 : vector<16x32xf32>
    %c568_59 = arith.constant 568 : index
    %c32_60 = arith.constant 32 : index
    %139 = vector.load %arg1[%c568_59, %c32_60] : memref<712x256xf32, #tpu.memory_space<vmem>>, vector<16x32xf32>
    %140 = arith.mulf %138, %139 : vector<16x32xf32>
    %c568_61 = arith.constant 568 : index
    %c64 = arith.constant 64 : index
    %141 = vector.load %arg1[%c568_61, %c64] : memref<712x256xf32, #tpu.memory_space<vmem>>, vector<16x32xf32>
    %142 = arith.addf %140, %141 : vector<16x32xf32>
    %c600 = arith.constant 600 : index
    %c0_62 = arith.constant 0 : index
    %143 = vector.load %arg1[%c600, %c0_62] : memref<712x256xf32, #tpu.memory_space<vmem>>, vector<16x16xf32>
    %cst_63 = arith.constant dense<0.000000e+00> : vector<16x32xf32>
    %144 = tpu.matmul %143, %142, %cst_63 {dimension_numbers = #tpu.dot_dimension_numbers<[1], [0], [0], [1], [0, 0, 1, 1], [], []>} : vector<16x16xf32>, vector<16x32xf32>, vector<16x32xf32> -> vector<16x32xf32>
    %c600_64 = arith.constant 600 : index
    %c16_65 = arith.constant 16 : index
    %145 = vector.load %arg1[%c600_64, %c16_65] : memref<712x256xf32, #tpu.memory_space<vmem>>, vector<16x1xf32>
    %146 = vector.broadcast %145 : vector<16x1xf32> to vector<16x32xf32>
    %147 = arith.addf %144, %146 : vector<16x32xf32>
    %cst_66 = arith.constant 0.000000e+00 : f32
    %148 = vector.broadcast %cst_66 : f32 to vector<16x32xf32>
    %149 = arith.maximumf %147, %148 : vector<16x32xf32>
    %c600_67 = arith.constant 600 : index
    %c17 = arith.constant 17 : index
    %150 = vector.load %arg1[%c600_67, %c17] : memref<712x256xf32, #tpu.memory_space<vmem>>, vector<1x16xf32>
    %cst_68 = arith.constant dense<0.000000e+00> : vector<1x32xf32>
    %151 = tpu.matmul %150, %149, %cst_68 {dimension_numbers = #tpu.dot_dimension_numbers<[1], [0], [0], [1], [0, 0, 1, 1], [], []>} : vector<1x16xf32>, vector<16x32xf32>, vector<1x32xf32> -> vector<1x32xf32>
    %c600_69 = arith.constant 600 : index
    %c33 = arith.constant 33 : index
    %152 = vector.load %arg1[%c600_69, %c33] : memref<712x256xf32, #tpu.memory_space<vmem>>, vector<1x1xf32>
    %153 = vector.broadcast %152 : vector<1x1xf32> to vector<1x32xf32>
    %154 = arith.addf %151, %153 : vector<1x32xf32>
    %c616 = arith.constant 616 : index
    %c0_70 = arith.constant 0 : index
    %155 = vector.load %arg1[%c616, %c0_70] : memref<712x256xf32, #tpu.memory_space<vmem>>, vector<64x1xf32>
    %156 = vector.broadcast %155 : vector<64x1xf32> to vector<64x32xf32>
    %157 = vector.broadcast %154 : vector<1x32xf32> to vector<64x32xf32>
    %158 = arith.mulf %156, %157 : vector<64x32xf32>
    %c616_71 = arith.constant 616 : index
    %c1_72 = arith.constant 1 : index
    %159 = vector.load %arg1[%c616_71, %c1_72] : memref<712x256xf32, #tpu.memory_space<vmem>>, vector<64x1xf32>
    %160 = vector.broadcast %159 : vector<64x1xf32> to vector<64x32xf32>
    %161 = arith.addf %158, %160 : vector<64x32xf32>
    %cst_73 = arith.constant 0.000000e+00 : f32
    %162 = vector.broadcast %cst_73 : f32 to vector<64x32xf32>
    %163 = arith.cmpf ogt, %161, %162 : vector<64x32xf32>
    %cst_74 = arith.constant 0.000000e+00 : f32
    %164 = vector.broadcast %cst_74 : f32 to vector<64x32xf32>
    %165 = arith.minimumf %161, %164 : vector<64x32xf32>
    %166 = math.exp %165 : vector<64x32xf32>
    %cst_75 = arith.constant 1.000000e+00 : f32
    %167 = vector.broadcast %cst_75 : f32 to vector<64x32xf32>
    %168 = arith.subf %166, %167 : vector<64x32xf32>
    %169 = arith.select %163, %161, %168 : vector<64x32xi1>, vector<64x32xf32>
    %c680 = arith.constant 680 : index
    %c0_76 = arith.constant 0 : index
    %170 = vector.load %arg1[%c680, %c0_76] : memref<712x256xf32, #tpu.memory_space<vmem>>, vector<32x64xf32>
    %cst_77 = arith.constant dense<0.000000e+00> : vector<32x32xf32>
    %171 = tpu.matmul %170, %169, %cst_77 {dimension_numbers = #tpu.dot_dimension_numbers<[1], [0], [0], [1], [0, 0, 1, 1], [], []>} : vector<32x64xf32>, vector<64x32xf32>, vector<32x32xf32> -> vector<32x32xf32>
    %c680_78 = arith.constant 680 : index
    %c64_79 = arith.constant 64 : index
    %172 = vector.load %arg1[%c680_78, %c64_79] : memref<712x256xf32, #tpu.memory_space<vmem>>, vector<32x1xf32>
    %173 = vector.broadcast %172 : vector<32x1xf32> to vector<32x32xf32>
    %174 = arith.addf %171, %173 : vector<32x32xf32>
    %cst_80 = arith.constant 0.000000e+00 : f32
    %175 = vector.broadcast %cst_80 : f32 to vector<32x32xf32>
    %176 = arith.cmpf ogt, %174, %175 : vector<32x32xf32>
    %cst_81 = arith.constant 0.000000e+00 : f32
    %177 = vector.broadcast %cst_81 : f32 to vector<32x32xf32>
    %178 = arith.minimumf %174, %177 : vector<32x32xf32>
    %179 = math.exp %178 : vector<32x32xf32>
    %cst_82 = arith.constant 1.000000e+00 : f32
    %180 = vector.broadcast %cst_82 : f32 to vector<32x32xf32>
    %181 = arith.subf %179, %180 : vector<32x32xf32>
    %182 = arith.select %176, %174, %181 : vector<32x32xi1>, vector<32x32xf32>
    %c680_83 = arith.constant 680 : index
    %c65 = arith.constant 65 : index
    %183 = vector.load %arg1[%c680_83, %c65] : memref<712x256xf32, #tpu.memory_space<vmem>>, vector<16x32xf32>
    %cst_84 = arith.constant dense<0.000000e+00> : vector<16x32xf32>
    %184 = tpu.matmul %183, %182, %cst_84 {dimension_numbers = #tpu.dot_dimension_numbers<[1], [0], [0], [1], [0, 0, 1, 1], [], []>} : vector<16x32xf32>, vector<32x32xf32>, vector<16x32xf32> -> vector<16x32xf32>
    %c680_85 = arith.constant 680 : index
    %c97 = arith.constant 97 : index
    %185 = vector.load %arg1[%c680_85, %c97] : memref<712x256xf32, #tpu.memory_space<vmem>>, vector<16x1xf32>
    %186 = vector.broadcast %185 : vector<16x1xf32> to vector<16x32xf32>
    %187 = arith.addf %184, %186 : vector<16x32xf32>
    %cst_86 = arith.constant 0.000000e+00 : f32
    %188 = vector.broadcast %cst_86 : f32 to vector<16x32xf32>
    %189 = arith.cmpf ogt, %187, %188 : vector<16x32xf32>
    %cst_87 = arith.constant 0.000000e+00 : f32
    %190 = vector.broadcast %cst_87 : f32 to vector<16x32xf32>
    %191 = arith.minimumf %187, %190 : vector<16x32xf32>
    %192 = math.exp %191 : vector<16x32xf32>
    %cst_88 = arith.constant 1.000000e+00 : f32
    %193 = vector.broadcast %cst_88 : f32 to vector<16x32xf32>
    %194 = arith.subf %192, %193 : vector<16x32xf32>
    %195 = arith.select %189, %187, %194 : vector<16x32xi1>, vector<16x32xf32>
    %c680_89 = arith.constant 680 : index
    %c98 = arith.constant 98 : index
    %196 = vector.load %arg1[%c680_89, %c98] : memref<712x256xf32, #tpu.memory_space<vmem>>, vector<1x16xf32>
    %cst_90 = arith.constant dense<0.000000e+00> : vector<1x32xf32>
    %197 = tpu.matmul %196, %195, %cst_90 {dimension_numbers = #tpu.dot_dimension_numbers<[1], [0], [0], [1], [0, 0, 1, 1], [], []>} : vector<1x16xf32>, vector<16x32xf32>, vector<1x32xf32> -> vector<1x32xf32>
    %c680_91 = arith.constant 680 : index
    %c114 = arith.constant 114 : index
    %198 = vector.load %arg1[%c680_91, %c114] : memref<712x256xf32, #tpu.memory_space<vmem>>, vector<1x1xf32>
    %199 = vector.broadcast %198 : vector<1x1xf32> to vector<1x32xf32>
    %200 = arith.addf %197, %199 : vector<1x32xf32>
    %c0_92 = arith.constant 0 : index
    %c0_93 = arith.constant 0 : index
    %201 = vector.load %arg2[%c0_92, %c0_93] : memref<1x32xf32, #tpu.memory_space<vmem>>, vector<1x32xf32>
    tpu.vector_store %arg2[%c0_92, %c0_93], %200 {strides = array<i32>} : memref<1x32xf32, #tpu.memory_space<vmem>>, vector<1x32xf32>,
    return
  }
}

</mosaic_0001>

<bundles_post_ra>
// kernel: forward.1
= control target key start
LH: loop header
LB: loop body
LE: loop exit
PB: predicated region body
PF: predicated region fallthrough
CT: control target
= control target key end

     0   :  { %7 = vsyncpa [#allocation3], 0  ;;  %s1727_s12 = smov [#allocation2]   ;;  %s1728_s14 = smov 256   ;;  %s2106_s0 = inlined_call_operand.vmem [shape: f32[1,256], index: 0, kind: input, shape index: {}]   ;;  %s2107_s1 = inlined_call_operand.hbm [shape: f32[712,256], index: 1, kind: input, shape index: {}]   ;;  %s2108_s2 = inlined_call_operand.vmem [shape: f32[1,32], index: 2, kind: output, shape index: {}]  }
   0x1   :  { %s14_s11 = sshll.u32 %s2107_s1, 4  ;;  %s16_s13 = sshll.u32 %s1727_s12, 4  ;;  %s15_s11 = int_to_ptr.hbm [resolvable:$true] %s14_s11  ;;  %s17_s13 = int_to_ptr.vmem [resolvable:$true] %s16_s13 }
   0x2   :  { %s1729_s15 = smov 16  }
   0x3   :  { %22 = dma.hbm_to_vmem [thread:$0]  %s15_s11, 22784, %s17_s13, [#allocation3], %s1728_s14, %s1728_s14, %s1729_s15  }
   0x4   :  { %1725 = dma.done.wait [#allocation3], 22784  }
   0x5   :  { %1726 = vsyncadd [#allocation3], 4294944512  ;;  %v1730_v0 = vmov 0   ;;  %v50_v1 = vld [vmem:[#allocation2 + $0x30] sm:$0xff]  ;;  %v49_v2 = vld [vmem:[#allocation2 + $0x20] sm:$0xff]  ;;  %v1731_v6 = vmov 1  }
   0x6   :  { %1617 = vset.pattern.permute.xlu0 %v1730_v0  ;;  %1618 = vset.pattern.permute.xlu1 %v1730_v0  ;;  %v29_v3 = vld [vmem:[#allocation2 + $0x10] sm:$0xff]  ;;  %v88_v5 = vld [vmem:[#allocation2 + $0x40] sm:$0xff]  ;;  %s1732_s17 = smov 96   ;;  %vm77_vm0 = vcmask 785408   ;;  %vm116_vm1 = vcmask 523264   ;;  %v1734_v34 = vmov 8  }
   0x7   :  { %1619 = vset.pattern.permute.xlu2 %v1730_v0  ;;  %58 = vperm.xlu0 %1617, %v50_v1   ;;  %v89_v4 = vld [vmem:[#allocation2 + $0x50] sm:$0xff]  ;;  %v27_v7 = vld [vmem:[%s2106_s0] sm:$0x3]  ;;  %s1733_s0 = smov 64   ;;  %vm157_vm2 = vcmask 64512   ;;  %s1735_s18 = smov 124  }
   0x8   :  { %53 = vperm.xlu1 %1618, %v49_v2   ;;  %37 = vperm.xlu2 %1619, %v29_v3   ;;  %v1773_v8 = vperm.slane %v27_v7, 0  ;;  %v1775_v9 = vperm.slane %v27_v7, 1  ;;  %v28_v20 = vld [vmem:[#allocation2] sm:$0xff]  ;;  %v1803_v35 = vld [vmem:[#allocation2 + $0x150] sm:$0xff]  ;;  %s1736_s19 = smov 120   ;;  %vm338_vm3 = vcmask 1043456  }
   0x9   :  { %v1797_v31 = vld [vmem:[#allocation2 + $0x160] sm:$0xff]  ;;  %v1812_v44 = vld [vmem:[#allocation2 + $0x130] sm:$0xff]  ;;  %vm335_vm4 = vcmask 31744   ;;  %s1739_s20 = smov 32   ;;  %vm1030_vm8 = vcmask 261120   ;;  %s1741_s21 = smov 111  }
   0xa   :  { %v1799_v33 = vld [vmem:[#allocation2 + $0x60] sm:$0xf]  ;;  %252 = vmatpush.msra.mxu2 %v1797_v31  ;;  %v1818_v49 = vld [vmem:[#allocation2 + $0x110] sm:$0xff]  ;;  %vm1145_vm12 = vcmask 130048   ;;  %s1744_s22 = smov 63   ;;  %s1746_s23 = smov 30  }
   0xb   :  { %v1809_v41 = vld [vmem:[#allocation2 + $0x140] sm:$0xff]  ;;  %v1824_v54 = vld [vmem:[#allocation2 + $0xf0] sm:$0xff] }
   0xc   :  { %253 = vmatpush.msra.mxu2 %v1803_v35  ;;  %v1815_v47 = vld [vmem:[#allocation2 + $0x120] sm:$0xff]  ;;  %v1830_v57 = vld [vmem:[#allocation2 + $0xd0] sm:$0xff] }
   0xd   :  { %v1821_v52 = vld [vmem:[#allocation2 + $0x100] sm:$0xff]  ;;  %v1839_v7 = vld [vmem:[#allocation2 + $0xb0] sm:$0xff] }
   0xe   :  { %254 = vmatpush.msra.mxu2 %v1809_v41  ;;  %v1827_v56 = vld [vmem:[#allocation2 + $0xe0] sm:$0xff] }
   0xf   :  { %97 = vperm.xlu0 %1617, %v89_v4   ;;  %v1836_v2 = vld [vmem:[#allocation2 + $0xc0] sm:$0xff] }
  0x10   :  { %92 = vperm.xlu1 %1618, %v88_v5   ;;  %1622 = vset.pattern.permute.xlu2 %v1734_v34 }
  0x11   :  { %255 = vmatpush.msra.mxu2 %v1812_v44 }
  0x13   :  { %256 = vmatpush.msra.mxu2 %v1815_v47 }
  0x15   :  { %257 = vmatpush.msra.mxu2 %v1818_v49 }
  0x17   :  { %1620 = vset.pattern.permute.xlu0 %v1731_v6  ;;  %258 = vmatpush.msra.mxu2 %v1821_v52 }
  0x19   :  { %259 = vmatpush.msra.mxu2 %v1824_v54 }
  0x1b   :  { %260 = vmatpush.msra.mxu2 %v1827_v56 }
  0x1d   :  { %261 = vmatpush.msra.mxu2 %v1830_v57 }
  0x1f   :  { %262 = vmatpush.msra.mxu2 %v1836_v2 }
  0x21   :  { %263 = vmatpush.msra.mxu2 %v1839_v7 }
  0x62   :  { %v38_v23 = vpop.permute.xlu2 %37 }
  0x63   :  { %v48_v26 = vmul.f32 %v1775_v9, %v38_v23  ;;  %v47_v29 = vmul.f32 %v1773_v8, %v38_v23  ;;  %v1857_v23 = vld [vmem:[#allocation2 + $0x158] sm:$0xff] }
  0x79   :  { %v59_v10 = vpop.permute.xlu0 %58 }
  0x7a   :  { %v63_v11 = vmul.f32 %v59_v10, %v1773_v8  ;;  %v64_v12 = vmul.f32 %v59_v10, %v1775_v9  ;;  %v54_v13 = vpop.permute.xlu1 %53 }
  0x7b   :  { %v61_v19 = vmul.f32 %v54_v13, %v1773_v8  ;;  %v62_v21 = vmul.f32 %v54_v13, %v1775_v9  ;;  %v1846_v13 = vld [vmem:[#allocation2 + $0x90] sm:$0xff] }
  0x7c   :  { %75 = vrot.lane.b32.xlu0 %v64_v12, %s1732_s17  ;;  %73 = vrot.lane.b32.xlu2 %v63_v11, %s1732_s17 }
  0x81   :  { %v98_v14 = vpop.permute.xlu0 %97 }
  0x82   :  { %v102_v15 = vmul.f32 %v98_v14, %v1773_v8  ;;  %v103_v16 = vmul.f32 %v98_v14, %v1775_v9  ;;  %v93_v17 = vpop.permute.xlu1 %92 }
  0x83   :  { %v101_v18 = vmul.f32 %v93_v17, %v1775_v9  ;;  %v100_v22 = vmul.f32 %v93_v17, %v1773_v8 }
  0x84   :  { %132 = vperm.xlu0 %1620, %v29_v3   ;;  %112 = vrot.lane.b32.xlu1 %v102_v15, %s1733_s0 }
  0x85   :  { %114 = vrot.lane.b32.xlu2 %v103_v16, %s1733_s0 }
  0x8c   :  { %110 = vrot.lane.b32.xlu0 %v101_v18, %s1733_s0  ;;  %32 = vperm.xlu1 %1618, %v28_v20  }
  0x8d   :  { %69 = vrot.lane.b32.xlu2 %v61_v19, %s1732_s17  ;;  %1626 = vset.pattern.permute.xlu0 %v1734_v34 }
  0x94   :  { %71 = vrot.lane.b32.xlu1 %v62_v21, %s1732_s17  ;;  %v1849_v21 = vld [vmem:[#allocation2 + $0x168] sm:$0xff] }
  0x95   :  { %108 = vrot.lane.b32.xlu2 %v100_v22, %s1733_s0  ;;  %1621 = vset.pattern.permute.xlu1 %v1731_v6  ;;  %v1851_v22 = vld [vmem:[#allocation2 + $0x1e0] sm:$0xff] }
  0x9c   :  { %128 = vperm.xlu1 %1621, %v28_v20  }
  0x9d   :  { %154 = vperm.xlu2 %1622, %v1799_v33  }
  0xd6   :  { %v74_v24 = vpop.permute.xlu2 %73 }
  0xdf   :  { %v115_v30 = vpop.permute.xlu2 %114 }
  0xe7   :  { %v70_v53 = vpop.permute.xlu2 %69 }
  0xee   :  { %v76_v25 = vpop.permute.xlu0 %75 }
  0xef   :  { %v87_v27 = vadd.f32 %v76_v25, %v48_v26  ;;  %v79_v28 = vsel %vm77_vm0, %v74_v24, %v76_v25  ;;  %v109_v10 = vpop.permute.xlu2 %108  ;;  %v1859_v24 = vld [vmem:[#allocation2 + $0x1d0] sm:$0xff]  ;;  %v1863_v25 = vld [vmem:[#allocation2 + $0x148] sm:$0xff]  ;;  %v1865_v26 = vld [vmem:[#allocation2 + $0x1c0] sm:$0xff] }
  0xf0   :  { %v86_v36 = vadd.f32 %v79_v28, %v47_v29  ;;  %v1871_v28 = vld [vmem:[#allocation2 + $0x1b0] sm:$0xff]  ;;  %v1875_v29 = vld [vmem:[#allocation2 + $0x128] sm:$0xff] }
  0xf1   :  { %v126_v32 = vadd.f32 %v115_v30, %v87_v27  ;;  %v1869_v27 = vld [vmem:[#allocation2 + $0x138] sm:$0xff] }
  0xf6   :  { %v133_v37 = vpop.permute.xlu0 %132  ;;  %v113_v38 = vpop.permute.xlu1 %112 }
  0xf7   :  { %v138_v39 = vadd.f32 %v133_v37, %v126_v32  ;;  %v118_v40 = vsel %vm116_vm1, %v113_v38, %v115_v30  ;;  %v1877_v30 = vld [vmem:[#allocation2 + $0x1a0] sm:$0xff]  ;;  %v1881_v32 = vld [vmem:[#allocation2 + $0x118] sm:$0xff] }
  0xf8   :  { %v125_v42 = vadd.f32 %v118_v40, %v86_v36  ;;  %v219_v36 = vld [vmem:[#allocation2 + $0x108] sm:$0xff]  ;;  %v217_v38 = vld [vmem:[#allocation2 + $0xf8] sm:$0xff] }
  0xf9   :  { %v140_v43 = vsub.f32 0.0, %v138_v39  ;;  %v1891_v39 = vld [vmem:[#allocation2 + $0x170] sm:$0xff]  ;;  %v1894_v40 = vld [vmem:[#allocation2 + $0x1e8] sm:$0xff] }
  0xfa   :  { %v137_v45 = vadd.f32 %v133_v37, %v125_v42  ;;  %v1887_v37 = vld [vmem:[#allocation2 + $0x180] sm:$0xff]  ;;  %v215_v42 = vld [vmem:[#allocation2 + $0xe8] sm:$0xff] }
  0xfb   :  { %v143_v46 = vmul.f32 1.442695, %v140_v43  ;;  %v1897_v43 = vld [vmem:[#allocation2 + $0x1d8] sm:$0xff] }
  0xfc   :  { %v139_v48 = vsub.f32 0.0, %v137_v45  ;;  %v213_v45 = vld [vmem:[#allocation2 + $0xd8] sm:$0xff] }
  0xfd   :  { %1649 = vpow2.f32 %v143_v46  ;;  %v211_v46 = vld [vmem:[#allocation2 + $0xc8] sm:$0xff] }
  0xfe   :  { %v141_v50 = vmul.f32 1.442695, %v139_v48  ;;  %v33_v51 = vpop.permute.xlu1 %32  ;;  %v111_v3 = vpop.permute.xlu0 %110  ;;  %v209_v48 = vld [vmem:[#allocation2 + $0xb8] sm:$0xff] }
  0xff   :  { %v45_v61 = vmul.f32 %v1773_v8, %v33_v51  ;;  %v46_v62 = vmul.f32 %v1775_v9, %v33_v51  ;;  %v1842_v8 = vld [vmem:[#allocation2 + $0xa0] sm:$0xff]  ;;  %v117_v9 = vsel %vm116_vm1, %v109_v10, %v111_v3  ;;  %v205_v51 = vld [vmem:[#allocation2 + $0x98] sm:$0xff] }
 0x100   :  { %1651 = vpow2.f32 %v141_v50  ;;  %264 = vmatpush.msra.mxu2 %v1842_v8  ;;  %v207_v50 = vld [vmem:[#allocation2 + $0xa8] sm:$0xff] }
 0x102   :  { %265 = vmatpush.msra.mxu2 %v1846_v13 }
 0x103   :  { %v1650_v55 = vpop.eup %1649 }
 0x104   :  { %v146_v59 = vadd.f32 1.0, %v1650_v55  ;;  %v1901_v55 = vld [vmem:[#allocation2 + $0x1c8] sm:$0xff] }
 0x106   :  { %v1652_v58 = vpop.eup %1651  ;;  %v72_v60 = vpop.permute.xlu1 %71 }
 0x107   :  { %v78_v63 = vsel %vm77_vm0, %v70_v53, %v72_v60  ;;  %v145_v1 = vadd.f32 1.0, %v1652_v58  ;;  %v85_v5 = vadd.f32 %v72_v60, %v46_v62  ;;  %v202_v53 = vld [vmem:[#allocation2 + $0x80] sm:$0xff]  ;;  %v203_v58 = vld [vmem:[#allocation2 + $0x88] sm:$0xff]  ;;  %v201_v60 = vld [vmem:[#allocation2 + $0x78] sm:$0xff] }
 0x108   :  { %v84_v4 = vadd.f32 %v78_v63, %v45_v61  ;;  %266 = vmatpush.msra.mxu2 %v202_v53  ;;  %v1904_v61 = vld [vmem:[#allocation2 + $0x1b8] sm:$0xff]  ;;  %v1907_v62 = vld [vmem:[#allocation2 + $0x1a8] sm:$0xff] }
 0x109   :  { %1653 = vrcp.f32 %v145_v1  ;;  %v124_v11 = vadd.f32 %v111_v3, %v85_v5  ;;  %v1909_v63 = vld [vmem:[#allocation2 + $0x198] sm:$0xff]  ;;  %v1914_v1 = vld [vmem:[#allocation2 + $0x188] sm:$0xff] }
 0x10a   :  { %1655 = vrcp.f32 %v146_v59  ;;  %v123_v12 = vadd.f32 %v117_v9, %v84_v4  ;;  %v200_v59 = vld [vmem:[#allocation2 + $0x70] sm:$0xff]  ;;  %v1919_v3 = vld [vmem:[#allocation2 + $0x178] sm:$0xff] }
 0x10b   :  { %267 = vmatpush.msra.mxu2 %v200_v59 }
 0x10d   :  { %434 = vmatpush.msrb.mxu2 %v1797_v31  ;;  %v1926_v31 = vld [vmem:[#allocation2 + $0x1f0] sm:$0xf] }
 0x10e   :  { %v129_v14 = vpop.permute.xlu1 %128  ;;  %333 = vrot.lane.b32.xlu0 %v1926_v31, %s1735_s18  ;;  %518 = vrot.lane.b32.xlu1 %v1926_v31, %s1736_s19 }
 0x10f   :  { %v1654_v15 = vpop.eup %1653  ;;  %v135_v16 = vadd.f32 %v129_v14, %v123_v12  ;;  %v136_v17 = vadd.f32 %v129_v14, %v124_v11  ;;  %435 = vmatpush.msrb.mxu2 %v1803_v35  ;;  %v155_v35 = vpop.permute.xlu2 %154 }
 0x110   :  { %v1656_v18 = vpop.eup %1655 }
 0x111   :  { %v149_v19 = vmul.f32 %v1654_v15, %v135_v16  ;;  %v150_v20 = vmul.f32 %v1656_v18, %v136_v17  ;;  %436 = vmatpush.msrb.mxu2 %v1809_v41 }
 0x113   :  { %175 = vmatpush.msra.mxu0 %v149_v19  ;;  %195 = vmatpush.msra.mxu1 %v150_v20 }
 0x114   :  { %1527 = vmatmul.msk.f32.vlgmr.msra.gmra.mxu0 %vm157_vm2, %v1799_v33  ;;  %1528 = vmatmul.msk.f32.vlgmr.msra.gmra.mxu1 %vm157_vm2, %v1799_v33  ;;  %v1883_v33 = vld [vmem:[#allocation2 + $0x190] sm:$0xff] }
 0x115   :  { %292 = vmatpush.msrb.mxu0 %v1849_v21  ;;  %280 = vmatpush.msrb.mxu1 %v1851_v22 }
 0x116   :  { %437 = vmatpush.msrb.mxu2 %v1812_v44 }
 0x117   :  { %293 = vmatpush.msrb.mxu0 %v1857_v23  ;;  %281 = vmatpush.msrb.mxu1 %v1859_v24 }
 0x118   :  { %438 = vmatpush.msrb.mxu2 %v1815_v47 }
 0x119   :  { %294 = vmatpush.msrb.mxu0 %v1863_v25  ;;  %282 = vmatpush.msrb.mxu1 %v1865_v26 }
 0x11a   :  { %439 = vmatpush.msrb.mxu2 %v1818_v49 }
 0x11b   :  { %295 = vmatpush.msrb.mxu0 %v1869_v27  ;;  %283 = vmatpush.msrb.mxu1 %v1871_v28 }
 0x11c   :  { %440 = vmatpush.msrb.mxu2 %v1821_v52 }
 0x11d   :  { %296 = vmatpush.msrb.mxu0 %v1875_v29  ;;  %284 = vmatpush.msrb.mxu1 %v1877_v30 }
 0x11e   :  { %441 = vmatpush.msrb.mxu2 %v1824_v54 }
 0x11f   :  { %297 = vmatpush.msrb.mxu0 %v1881_v32  ;;  %285 = vmatpush.msrb.mxu1 %v1883_v33 }
 0x120   :  { %442 = vmatpush.msrb.mxu2 %v1827_v56 }
 0x121   :  { %298 = vmatpush.msrb.mxu0 %v219_v36  ;;  %286 = vmatpush.msrb.mxu1 %v1887_v37 }
 0x122   :  { %443 = vmatpush.msrb.mxu2 %v1830_v57 }
 0x123   :  { %299 = vmatpush.msrb.mxu0 %v217_v38  ;;  %287 = vmatpush.msrb.mxu1 %v1891_v39 }
 0x124   :  { %444 = vmatpush.msrb.mxu2 %v1836_v2 }
 0x125   :  { %320 = vmatpush.msra.mxu1 %v1894_v40  ;;  %300 = vmatpush.msrb.mxu0 %v215_v42 }
 0x126   :  { %445 = vmatpush.msrb.mxu2 %v1839_v7  ;;  %v1737_v7 = vmov 12  }
 0x127   :  { %321 = vmatpush.msra.mxu1 %v1897_v43  ;;  %301 = vmatpush.msrb.mxu0 %v213_v45 }
 0x128   :  { %446 = vmatpush.msrb.mxu2 %v1842_v8  ;;  %1623 = vset.pattern.permute.xlu2 %v1737_v7 }
 0x129   :  { %302 = vmatpush.msrb.mxu0 %v211_v46  ;;  %322 = vmatpush.msra.mxu1 %v1901_v55 }
 0x12a   :  { %447 = vmatpush.msrb.mxu2 %v1846_v13  ;;  %571 = vperm.xlu2 %1623, %v1926_v31  }
 0x12b   :  { %303 = vmatpush.msrb.mxu0 %v209_v48  ;;  %323 = vmatpush.msra.mxu1 %v1904_v61 }
 0x12c   :  { %448 = vmatpush.msrb.mxu2 %v202_v53  ;;  %v653_v53 = vld [vmem:[#allocation2 + $0x240] sm:$0xff] }
 0x12d   :  { %304 = vmatpush.msrb.mxu0 %v207_v50  ;;  %324 = vmatpush.msra.mxu1 %v1907_v62 }
 0x12e   :  { %449 = vmatpush.msrb.mxu2 %v200_v59  ;;  %v724_v59 = vld [vmem:[#allocation2 + $0x350] sm:$0xff] }
 0x12f   :  { %305 = vmatpush.msrb.mxu0 %v205_v51  ;;  %325 = vmatpush.msra.mxu1 %v1909_v63 }
 0x131   :  { %306 = vmatpush.msrb.mxu0 %v203_v58  ;;  %326 = vmatpush.msra.mxu1 %v1914_v1 }
 0x133   :  { %307 = vmatpush.msrb.mxu0 %v201_v60  ;;  %327 = vmatpush.msra.mxu1 %v1919_v3 }
 0x135   :  { %474 = vmatpush.msra.mxu0 %v1849_v21 }
 0x137   :  { %475 = vmatpush.msra.mxu0 %v1857_v23 }
 0x139   :  { %476 = vmatpush.msra.mxu0 %v1863_v25 }
 0x13b   :  { %477 = vmatpush.msra.mxu0 %v1869_v27 }
 0x13d   :  { %478 = vmatpush.msra.mxu0 %v1875_v29 }
 0x13f   :  { %479 = vmatpush.msra.mxu0 %v1881_v32 }
 0x141   :  { %480 = vmatpush.msra.mxu0 %v219_v36 }
 0x143   :  { %481 = vmatpush.msra.mxu0 %v217_v38 }
 0x145   :  { %482 = vmatpush.msra.mxu0 %v215_v42  ;;  %v1738_v42 = vmov 4  }
 0x146   :  { %1624 = vset.pattern.permute.xlu1 %v1738_v42  ;;  %1625 = vset.pattern.permute.xlu2 %v1738_v42 }
 0x147   :  { %483 = vmatpush.msra.mxu0 %v213_v45 }
 0x149   :  { %484 = vmatpush.msra.mxu0 %v211_v46  ;;  %v582_v46 = vld [vmem:[#allocation2 + $0x220] sm:$0xff] }
 0x14b   :  { %485 = vmatpush.msra.mxu0 %v209_v48 }
 0x14d   :  { %486 = vmatpush.msra.mxu0 %v207_v50 }
 0x14f   :  { %487 = vmatpush.msra.mxu0 %v205_v51 }
 0x151   :  { %488 = vmatpush.msra.mxu0 %v203_v58 }
 0x153   :  { %489 = vmatpush.msra.mxu0 %v201_v60  ;;  %v723_v60 = vld [vmem:[#allocation2 + $0x340] sm:$0xff] }
 0x180   :  { %v334_v57 = vpop.permute.xlu0 %333 }
 0x191   :  { %v197_v41 = vpop.f32.mrf.mxu1  ;;  %v177_v44 = vpop.f32.mrf.mxu0 }
 0x192   :  { %v1942_v47 = vadd.f32 %v197_v41, %v155_v35  ;;  %v1944_v49 = vadd.f32 %v177_v44, %v155_v35  ;;  %v718_v35 = vld [vmem:[#allocation2 + $0x2f0] sm:$0xff]  ;;  %v717_v41 = vld [vmem:[#allocation2 + $0x2e0] sm:$0xff] }
 0x194   :  { %268 = vmatmul.f32.vlgmr.msra.gmra.mxu2 %v1944_v49  ;;  %1529 = vmatmul.msk.f32.vlgmr.msrb.gmra.mxu1 %vm116_vm1, %v1942_v47 }
 0x195   :  { %308 = vmatmul.f32.vlgmr.msrb.gmra.mxu0 %v1944_v49 }
 0x196   :  { %760 = vmatpush.msrb.mxu0 %v724_v59 }
 0x198   :  { %761 = vmatpush.msrb.mxu0 %v723_v60 }
 0x19c   :  { %1530 = vmatmul.msk.f32.vlgmr.msra.gmra.mxu1 %vm116_vm1, %v1942_v47 }
 0x211   :  { %v289_v52 = vpop.f32.mrf.mxu1 }
 0x212   :  { %v309_v2 = vpop.f32.mrf.mxu0 }
 0x217   :  { %v269_v54 = vpop.f32.mrf.mxu2 }
 0x218   :  { %v290_v56 = vadd.f32 %v289_v52, %v269_v54 }
 0x219   :  { %v329_v4 = vpop.f32.mrf.mxu1 }
 0x21a   :  { %v330_v5 = vadd.f32 %v329_v4, %v309_v2  ;;  %1531 = vmatpush.msk.msra.mxu3 %vm338_vm3, %v290_v56  ;;  %450 = vmatmul.f32.vlgmr.msrb.gmra.mxu2 %v290_v56  ;;  %v712_v4 = vld [vmem:[#allocation2 + $0x290] sm:$0xff] }
 0x21b   :  { %490 = vmatmul.f32.vlgmr.msra.gmra.mxu0 %v290_v56  ;;  %1532 = vmatmul.msk.f32.vlgmr.msra.gmra.mxu3 %vm335_vm4, %v334_v57  ;;  %v714_v56 = vld [vmem:[#allocation2 + $0x2b0] sm:$0xff] }
 0x21c   :  { %1535 = vmatpush.msk.msrb.mxu3 %vm338_vm3, %v1944_v49  ;;  %1533 = vmatpush.msk.msrb.mxu1 %vm338_vm3, %v330_v5 }
 0x21d   :  { %1534 = vmatmul.msk.f32.vlgmr.msrb.gmra.mxu1 %vm335_vm4, %v334_v57  ;;  %v713_v57 = vld [vmem:[#allocation2 + $0x2a0] sm:$0xff] }
 0x21e   :  { %462 = vmatpush.msra.mxu3 %v1851_v22  ;;  %1537 = vmatpush.msk.msra.mxu1 %vm338_vm3, %v1942_v47  ;;  %v519_v22 = vpop.permute.xlu1 %518 }
 0x220   :  { %463 = vmatpush.msra.mxu3 %v1859_v24  ;;  %502 = vmatpush.msrb.mxu1 %v1894_v40  ;;  %v581_v40 = vld [vmem:[#allocation2 + $0x210] sm:$0xff] }
 0x222   :  { %464 = vmatpush.msra.mxu3 %v1865_v26  ;;  %503 = vmatpush.msrb.mxu1 %v1897_v43  ;;  %v572_v26 = vpop.permute.xlu2 %571 }
 0x223   :  { %1536 = vmatmul.msk.f32.vlgmr.msrb.gmra.mxu3 %vm335_vm4, %v1926_v31 }
 0x224   :  { %465 = vmatpush.msra.mxu3 %v1871_v28  ;;  %504 = vmatpush.msrb.mxu1 %v1901_v55  ;;  %v583_v55 = vld [vmem:[#allocation2 + $0x230] sm:$0xff] }
 0x225   :  { %1538 = vmatmul.msk.f32.vlgmr.msra.gmra.mxu1 %vm335_vm4, %v1926_v31  ;;  %v719_v31 = vld [vmem:[#allocation2 + $0x300] sm:$0xff] }
 0x226   :  { %466 = vmatpush.msra.mxu3 %v1877_v30  ;;  %505 = vmatpush.msrb.mxu1 %v1904_v61  ;;  %v722_v61 = vld [vmem:[#allocation2 + $0x330] sm:$0xff] }
 0x227   :  { %762 = vmatpush.msrb.mxu0 %v722_v61 }
 0x228   :  { %467 = vmatpush.msra.mxu3 %v1883_v33  ;;  %506 = vmatpush.msrb.mxu1 %v1907_v62  ;;  %v721_v62 = vld [vmem:[#allocation2 + $0x320] sm:$0xff] }
 0x229   :  { %763 = vmatpush.msrb.mxu0 %v721_v62 }
 0x22a   :  { %468 = vmatpush.msra.mxu3 %v1887_v37  ;;  %507 = vmatpush.msrb.mxu1 %v1909_v63 }
 0x22c   :  { %469 = vmatpush.msra.mxu3 %v1891_v39  ;;  %508 = vmatpush.msrb.mxu1 %v1914_v1  ;;  %v580_v39 = vld [vmem:[#allocation2 + $0x200] sm:$0xff] }
 0x22d   :  { %1539 = vmatmul.msk.f32.vlgmr.msra.gmra.mxu3 %vm116_vm1, %v330_v5 }
 0x22e   :  { %509 = vmatpush.msrb.mxu1 %v1919_v3  ;;  %v720_v3 = vld [vmem:[#allocation2 + $0x310] sm:$0xff] }
 0x22f   :  { %1540 = vmatmul.msk.f32.vlgmr.msrb.gmra.mxu1 %vm116_vm1, %v330_v5  ;;  %764 = vmatpush.msrb.mxu0 %v720_v3 }
 0x231   :  { %765 = vmatpush.msrb.mxu0 %v719_v31 }
 0x233   :  { %766 = vmatpush.msrb.mxu0 %v718_v35 }
 0x235   :  { %767 = vmatpush.msrb.mxu0 %v717_v41 }
 0x298   :  { %v491_v14 = vpop.f32.mrf.mxu0 }
 0x29a   :  { %v382_v10 = vpop.f32.mrf.mxu1 }
 0x29d   :  { %v451_v18 = vpop.f32.mrf.mxu2 }
 0x29e   :  { %v362_v8 = vpop.f32.mrf.mxu3 }
 0x2a2   :  { %v429_v9 = vpop.f32.mrf.mxu1 }
 0x2a3   :  { %v430_v11 = vadd.f32 %v429_v9, %v382_v10  ;;  %v711_v10 = vld [vmem:[#allocation2 + $0x280] sm:$0xff]  ;;  %v710_v9 = vld [vmem:[#allocation2 + $0x270] sm:$0xff] }
 0x2a6   :  { %v409_v12 = vpop.f32.mrf.mxu3 }
 0x2a7   :  { %v410_v13 = vadd.f32 %v409_v12, %v362_v8  ;;  %v709_v12 = vld [vmem:[#allocation2 + $0x260] sm:$0xff] }
 0x2ac   :  { %v511_v15 = vpop.f32.mrf.mxu1 }
 0x2ad   :  { %v512_v16 = vadd.f32 %v511_v15, %v491_v14 }
 0x2af   :  { %v515_v17 = vmul.f32 2.0, %v512_v16 }
 0x2b0   :  { %v471_v19 = vpop.f32.mrf.mxu3 }
 0x2b1   :  { %v517_v20 = vsub.f32 %v515_v17, %v1942_v47  ;;  %v472_v21 = vadd.f32 %v471_v19, %v451_v18 }
 0x2b3   :  { %v514_v23 = vmul.f32 2.0, %v472_v21  ;;  %1543 = vmatpush.msk.msra.mxu1 %vm338_vm3, %v517_v20 }
 0x2b4   :  { %1544 = vmatmul.msk.f32.vlgmr.msra.gmra.mxu1 %vm335_vm4, %v519_v22 }
 0x2b5   :  { %v516_v24 = vsub.f32 %v514_v23, %v1944_v49 }
 0x2b7   :  { %1541 = vmatpush.msk.msrb.mxu3 %vm338_vm3, %v516_v24 }
 0x2b8   :  { %1542 = vmatmul.msk.f32.vlgmr.msrb.gmra.mxu3 %vm335_vm4, %v519_v22 }
 0x331   :  { %v565_v25 = vpop.f32.mrf.mxu1 }
 0x332   :  { %v569_v27 = vadd.f32 %v565_v25, %v430_v11 }
 0x334   :  { %v575_v28 = vadd.f32 %v572_v26, %v569_v27 }
 0x336   :  { %v577_v29 = vadd.f32 %v575_v28, %v1942_v47  ;;  %v716_v47 = vld [vmem:[#allocation2 + $0x2d0] sm:$0xff] }
 0x337   :  { %768 = vmatpush.msrb.mxu0 %v716_v47 }
 0x338   :  { %v579_v30 = vmax.f32 %v577_v29, 0.0 }
 0x33a   :  { %588 = vrot.lane.b32.xlu1 %v579_v30, %s1732_s17 }
 0x33b   :  { %v545_v32 = vpop.f32.mrf.mxu3 }
 0x33c   :  { %v568_v33 = vadd.f32 %v545_v32, %v410_v13 }
 0x33e   :  { %v574_v36 = vadd.f32 %v572_v26, %v568_v33 }
 0x340   :  { %v576_v37 = vadd.f32 %v574_v36, %v1944_v49  ;;  %v715_v49 = vld [vmem:[#allocation2 + $0x2c0] sm:$0xff] }
 0x341   :  { %769 = vmatpush.msrb.mxu0 %v715_v49 }
 0x342   :  { %v578_v38 = vmax.f32 %v576_v37, 0.0  ;;  %698 = vperm.xlu1 %1624, %v581_v40  }
 0x343   :  { %770 = vmatpush.msrb.mxu0 %v714_v56 }
 0x344   :  { %655 = vrot.lane.b32.xlu2 %v578_v38, %s1733_s0  ;;  %586 = vrot.lane.b32.xlu0 %v578_v38, %s1732_s17 }
 0x345   :  { %1548 = vmatpush.msk.msrb.mxu1 %vm338_vm3, %v578_v38  ;;  %771 = vmatpush.msrb.mxu0 %v713_v57 }
 0x346   :  { %1549 = vmatmul.msk.f32.vlgmr.msrb.gmra.mxu1 %vm335_vm4, %v580_v39 }
 0x347   :  { %772 = vmatpush.msrb.mxu0 %v712_v4 }
 0x349   :  { %773 = vmatpush.msrb.mxu0 %v711_v10 }
 0x34a   :  { %1627 = vset.pattern.permute.xlu1 %v1734_v34 }
 0x34b   :  { %774 = vmatpush.msrb.mxu0 %v710_v9 }
 0x34c   :  { %657 = vrot.lane.b32.xlu0 %v579_v30, %s1733_s0  ;;  %694 = vperm.xlu2 %1625, %v580_v39  }
 0x34d   :  { %775 = vmatpush.msrb.mxu0 %v709_v12 }
 0x34e   :  { %1550 = vmatmul.msk.f32.gmra.mxu1 %vm335_vm4, %v581_v40 }
 0x354   :  { %1628 = vset.pattern.permute.xlu2 %v1734_v34  ;;  %v654_v34 = vld [vmem:[#allocation2 + $0x250] sm:$0xff] }
 0x39e   :  { %v656_v50 = vpop.permute.xlu2 %655 }
 0x3a6   :  { %v695_v19 = vpop.permute.xlu2 %694 }
 0x3ac   :  { %v589_v43 = vpop.permute.xlu1 %588 }
 0x3b4   :  { %v699_v7 = vpop.permute.xlu1 %698 }
 0x3b6   :  { %v587_v45 = vpop.permute.xlu0 %586 }
 0x3b7   :  { %v590_v48 = vsel %vm77_vm0, %v587_v45, %v589_v43 }
 0x3b8   :  { %1545 = vmatpush.msk.msra.mxu3 %vm338_vm3, %v590_v48 }
 0x3b9   :  { %1546 = vmatmul.msk.f32.vlgmr.msra.gmra.mxu3 %vm335_vm4, %v582_v46 }
 0x3ba   :  { %731 = vmatpush.msrb.mxu3 %v724_v59  ;;  %v792_v59 = vld [vmem:[#allocation2 + $0x360] sm:$0xff] }
 0x3bc   :  { %732 = vmatpush.msrb.mxu3 %v723_v60 }
 0x3be   :  { %v658_v51 = vpop.permute.xlu0 %657  ;;  %733 = vmatpush.msrb.mxu3 %v722_v61  ;;  %v794_v61 = vld [vmem:[#allocation2 + $0x368] sm:$0xff] }
 0x3bf   :  { %v659_v58 = vsel %vm116_vm1, %v656_v50, %v658_v51 }
 0x3c0   :  { %1551 = vmatpush.msk.msra.mxu2 %vm338_vm3, %v659_v58  ;;  %734 = vmatpush.msrb.mxu3 %v721_v62 }
 0x3c1   :  { %1552 = vmatmul.msk.f32.vlgmr.msra.gmra.mxu2 %vm335_vm4, %v653_v53  ;;  %1547 = vmatmul.msk.f32.gmra.mxu3 %vm335_vm4, %v583_v55 }
 0x3c2   :  { %735 = vmatpush.msrb.mxu3 %v720_v3  ;;  %v797_v3 = vld [vmem:[#allocation2 + $0x380] sm:$0xff] }
 0x3c3   :  { %v647_v1 = vpop.f32.mrf.mxu1 }
 0x3c4   :  { %736 = vmatpush.msrb.mxu3 %v719_v31 }
 0x3c6   :  { %737 = vmatpush.msrb.mxu3 %v718_v35  ;;  %v942_v35 = vld [vmem:[#allocation2 + $0x430] sm:$0xff] }
 0x3c8   :  { %738 = vmatpush.msrb.mxu3 %v717_v41  ;;  %v798_v41 = vld [vmem:[#allocation2 + $0x390] sm:$0xff] }
 0x3c9   :  { %1553 = vmatmul.msk.f32.gmra.mxu2 %vm335_vm4, %v654_v34 }
 0x3ca   :  { %739 = vmatpush.msrb.mxu3 %v716_v47  ;;  %v799_v47 = vld [vmem:[#allocation2 + $0x3a0] sm:$0xff] }
 0x3cb   :  { %v650_v54 = vpop.f32.mrf.mxu1 }
 0x3cc   :  { %740 = vmatpush.msrb.mxu3 %v715_v49  ;;  %v944_v49 = vld [vmem:[#allocation2 + $0x450] sm:$0xff] }
 0x3ce   :  { %741 = vmatpush.msrb.mxu3 %v714_v56  ;;  %v890_v56 = vld [vmem:[#allocation2 + $0x3f0] sm:$0xff] }
 0x3d0   :  { %742 = vmatpush.msrb.mxu3 %v713_v57  ;;  %v945_v57 = vld [vmem:[#allocation2 + $0x460] sm:$0xff] }
 0x3d2   :  { %743 = vmatpush.msrb.mxu3 %v712_v4  ;;  %v801_v4 = vld [vmem:[#allocation2 + $0x3c0] sm:$0xff] }
 0x3d4   :  { %744 = vmatpush.msrb.mxu3 %v711_v10  ;;  %v892_v10 = vld [vmem:[#allocation2 + $0x410] sm:$0xff] }
 0x3d6   :  { %745 = vmatpush.msrb.mxu3 %v710_v9  ;;  %v893_v9 = vld [vmem:[#allocation2 + $0x420] sm:$0xff] }
 0x3d8   :  { %746 = vmatpush.msrb.mxu3 %v709_v12 }
 0x43c   :  { %v616_v63 = vpop.f32.mrf.mxu3 }
 0x43d   :  { %v648_v16 = vadd.f32 %v647_v1, %v616_v63  ;;  %v796_v1 = vld [vmem:[#allocation2 + $0x370] sm:$0xff] }
 0x444   :  { %v685_v44 = vpop.f32.mrf.mxu2  ;;  %v619_v52 = vpop.f32.mrf.mxu3 }
 0x445   :  { %v651_v2 = vadd.f32 %v650_v54, %v619_v52  ;;  %v691_v18 = vadd.f32 %v685_v44, %v648_v16  ;;  %v943_v44 = vld [vmem:[#allocation2 + $0x440] sm:$0xff]  ;;  %v800_v52 = vld [vmem:[#allocation2 + $0x3b0] sm:$0xff] }
 0x447   :  { %v701_v20 = vadd.f32 %v695_v19, %v691_v18 }
 0x44c   :  { %v688_v5 = vpop.f32.mrf.mxu2 }
 0x44d   :  { %v692_v8 = vadd.f32 %v688_v5, %v651_v2  ;;  %v891_v5 = vld [vmem:[#allocation2 + $0x400] sm:$0xff] }
 0x44f   :  { %v702_v11 = vadd.f32 %v699_v7, %v692_v8  ;;  %v802_v7 = vld [vmem:[#allocation2 + $0x3d0] sm:$0xff]  ;;  %v803_v8 = vld [vmem:[#allocation2 + $0x3e0] sm:$0xff] }
 0x451   :  { %v703_v13 = vsub.f32 0.0, %v702_v11 }
 0x453   :  { %v704_v14 = vmul.f32 1.442695, %v703_v13 }
 0x455   :  { %1657 = vpow2.f32 %v704_v14 }
 0x45b   :  { %v1658_v15 = vpop.eup %1657 }
 0x45c   :  { %v706_v17 = vadd.f32 1.0, %v1658_v15 }
 0x45e   :  { %1659 = vrcp.f32 %v706_v17 }
 0x464   :  { %v1660_v21 = vpop.eup %1659 }
 0x465   :  { %v708_v22 = vmul.f32 %v1660_v21, %v701_v20 }
 0x467   :  { %v725_v23 = vrot.slane %v708_v22, 4 }
 0x469   :  { %v726_v24 = vadd.f32 %v725_v23, %v708_v22 }
 0x46b   :  { %v727_v25 = vrot.slane %v726_v24, 2 }
 0x46d   :  { %v728_v26 = vadd.f32 %v727_v25, %v726_v24 }
 0x46f   :  { %v729_v27 = vrot.slane %v728_v26, 1 }
 0x471   :  { %v730_v28 = vadd.f32 %v729_v27, %v728_v26 }
 0x473   :  { %747 = vmatmul.f32.vlgmr.msrb.gmra.mxu3 %v730_v28 }
 0x4f6   :  { %v748_v29 = vpop.f32.mrf.mxu3 }
 0x4f7   :  { %v751_v30 = vperm.slane %v748_v29, 0 }
 0x4f9   :  { %v752_v32 = vsub.f32 %v708_v22, %v751_v30 }
 0x4fb   :  { %v753_v33 = vmul.f32 %v752_v32, %v752_v32 }
 0x4fd   :  { %v754_v36 = vrot.slane %v753_v33, 4 }
 0x4ff   :  { %v755_v37 = vadd.f32 %v754_v36, %v753_v33  ;;  %v1028_v33 = vld [vmem:[#allocation2 + $0x490] sm:$0xff] }
 0x501   :  { %v756_v38 = vrot.slane %v755_v37, 2 }
 0x503   :  { %v757_v39 = vadd.f32 %v756_v38, %v755_v37  ;;  %v1027_v37 = vld [vmem:[#allocation2 + $0x480] sm:$0xff]  ;;  %v1026_v38 = vld [vmem:[#allocation2 + $0x470] sm:$0xff] }
 0x505   :  { %v758_v40 = vrot.slane %v757_v39, 1 }
 0x507   :  { %v759_v42 = vadd.f32 %v758_v40, %v757_v39 }
 0x509   :  { %776 = vmatmul.f32.vlgmr.msrb.gmra.mxu0 %v759_v42 }
 0x586   :  { %v777_v43 = vpop.f32.mrf.mxu0 }
 0x587   :  { %v778_v45 = vadd.f32 1e-05, %v777_v43 }
 0x589   :  { %1661 = vrsqrt.f32 %v778_v45  ;;  %vm786_vm6 = vweird.f32 %v778_v45 }
 0x58f   :  { %v1662_v46 = vpop.eup %1661 }
 0x590   :  { %v781_v48 = vmul.f32 %v1662_v46, %v778_v45  ;;  %vm787_vm5 = vweird.f32 %v1662_v46 }
 0x591   :  { %vm788_vm7 = vmor %vm786_vm6, %vm787_vm5 }
 0x592   :  { %v782_v50 = vmul.f32 %v1662_v46, %v781_v48 }
 0x594   :  { %v783_v51 = vmul.f32 0.5, %v782_v50 }
 0x596   :  { %v784_v53 = vsub.f32 1.5, %v783_v51 }
 0x598   :  { %v785_v55 = vmul.f32 %v1662_v46, %v784_v53 }
 0x59a   :  { %v789_v58 = vsel %vm788_vm7, %v1662_v46, %v785_v55 }
 0x59b   :  { %v790_v34 = vperm.slane %v789_v58, 0 }
 0x59d   :  { %v791_v60 = vmul.f32 %v790_v34, %v752_v32  ;;  %v1029_v32 = vld [vmem:[#allocation2 + $0x4a0] sm:$0xff] }
 0x59f   :  { %v793_v62 = vmul.f32 %v792_v59, %v791_v60 }
 0x5a1   :  { %v795_v63 = vadd.f32 %v794_v61, %v793_v62 }
 0x5a3   :  { %946 = vrot.lane.b32.xlu2 %v795_v63, %s1739_s20  ;;  %805 = vrot.lane.b32.xlu1 %v795_v63, %s1732_s17 }
 0x5a4   :  { %894 = vrot.lane.b32.xlu0 %v795_v63, %s1733_s0  ;;  %876 = vmatpush.msrb.mxu2 %v795_v63 }
 0x5a5   :  { %1558 = vmatmul.msk.f32.vlgmr.msrb.gmra.mxu2 %vm157_vm2, %v796_v1 }
 0x5a6   :  { %1092 = vmatpush.msra.mxu2 %v1029_v32 }
 0x5a8   :  { %1093 = vmatpush.msra.mxu2 %v1028_v33 }
 0x5aa   :  { %1094 = vmatpush.msra.mxu2 %v1027_v37 }
 0x5ab   :  { %995 = vperm.xlu2 %1628, %v796_v1   ;;  %1007 = vperm.xlu1 %1627, %v799_v47  }
 0x5ac   :  { %1003 = vperm.xlu0 %1626, %v798_v41   ;;  %1095 = vmatpush.msra.mxu2 %v1026_v38 }
 0x5ad   :  { %1559 = vmatmul.msk.f32.gmra.mxu2 %vm157_vm2, %v797_v3 }
 0x5b3   :  { %1632 = vset.pattern.permute.xlu2 %v1730_v0  ;;  %999 = vperm.xlu1 %1627, %v797_v3  }
 0x5b4   :  { %1117 = vrot.lane.b32.xlu0 %v1026_v38, %s1732_s17  ;;  %1119 = vrot.lane.b32.xlu2 %v1027_v37, %s1732_s17 }
 0x5b5   :  { %1560 = vmatmul.msk.f32.gmra.mxu2 %vm157_vm2, %v798_v41 }
 0x5bb   :  { %1127 = vrot.lane.b32.xlu1 %v1027_v37, %s1733_s0 }
 0x5bc   :  { %1125 = vrot.lane.b32.xlu2 %v1026_v38, %s1733_s0 }
 0x5bd   :  { %1561 = vmatmul.msk.f32.gmra.mxu2 %vm157_vm2, %v799_v47 }
 0x5fd   :  { %v947_v31 = vpop.permute.xlu2 %946 }
 0x5fe   :  { %976 = vmatpush.msra.mxu0 %v947_v31 }
 0x5ff   :  { %1566 = vmatmul.msk.f32.vlgmr.msra.gmra.mxu0 %vm157_vm2, %v942_v35 }
 0x605   :  { %v996_v1 = vpop.permute.xlu2 %995 }
 0x607   :  { %1567 = vmatmul.msk.f32.gmra.mxu0 %vm157_vm2, %v943_v44 }
 0x60f   :  { %1568 = vmatmul.msk.f32.gmra.mxu0 %vm157_vm2, %v944_v49 }
 0x615   :  { %v806_v54 = vpop.permute.xlu1 %805 }
 0x616   :  { %v895_v2 = vpop.permute.xlu0 %894  ;;  %835 = vmatpush.msra.mxu1 %v806_v54 }
 0x617   :  { %924 = vmatpush.msra.mxu3 %v895_v2  ;;  %1554 = vmatmul.msk.f32.vlgmr.msra.gmra.mxu1 %vm157_vm2, %v800_v52 }
 0x618   :  { %1562 = vmatmul.msk.f32.vlgmr.msra.gmra.mxu3 %vm157_vm2, %v890_v56  ;;  %1569 = vmatmul.msk.f32.gmra.mxu0 %vm157_vm2, %v945_v57 }
 0x619   :  { %1055 = vmatpush.msrb.mxu1 %v1029_v32  ;;  %v1740_v32 = vmov 16  }
 0x61a   :  { %1630 = vset.pattern.permute.xlu1 %v1740_v32  ;;  %1629 = vset.pattern.permute.xlu0 %v1740_v32 }
 0x61b   :  { %1056 = vmatpush.msrb.mxu1 %v1028_v33 }
 0x61d   :  { %1057 = vmatpush.msrb.mxu1 %v1027_v37  ;;  %v1008_v46 = vpop.permute.xlu1 %1007 }
 0x61e   :  { %v1004_v25 = vpop.permute.xlu0 %1003 }
 0x61f   :  { %1555 = vmatmul.msk.f32.gmra.mxu1 %vm157_vm2, %v801_v4 }
 0x620   :  { %1563 = vmatmul.msk.f32.gmra.mxu3 %vm157_vm2, %v891_v5  ;;  %1058 = vmatpush.msrb.mxu1 %v1026_v38 }
 0x625   :  { %v1000_v35 = vpop.permute.xlu1 %999 }
 0x627   :  { %1556 = vmatmul.msk.f32.gmra.mxu1 %vm157_vm2, %v802_v7 }
 0x628   :  { %1564 = vmatmul.msk.f32.gmra.mxu3 %vm157_vm2, %v892_v10  ;;  %v878_v11 = vpop.f32.mrf.mxu2 }
 0x62f   :  { %1557 = vmatmul.msk.f32.gmra.mxu1 %vm157_vm2, %v803_v8 }
 0x630   :  { %1565 = vmatmul.msk.f32.gmra.mxu3 %vm157_vm2, %v893_v9  ;;  %v881_v14 = vpop.f32.mrf.mxu2 }
 0x638   :  { %v884_v19 = vpop.f32.mrf.mxu2 }
 0x640   :  { %v887_v27 = vpop.f32.mrf.mxu2 }
 0x67c   :  { %v978_v13 = vpop.f32.mrf.mxu0 }
 0x684   :  { %v981_v17 = vpop.f32.mrf.mxu0 }
 0x68c   :  { %v984_v22 = vpop.f32.mrf.mxu0 }
 0x694   :  { %v837_v12 = vpop.f32.mrf.mxu1 }
 0x695   :  { %v987_v40 = vpop.f32.mrf.mxu0  ;;  %v879_v55 = vadd.f32 %v878_v11, %v837_v12 }
 0x69b   :  { %v926_v15 = vpop.f32.mrf.mxu3 }
 0x69c   :  { %v840_v16 = vpop.f32.mrf.mxu1  ;;  %v938_v59 = vadd.f32 %v926_v15, %v879_v55 }
 0x69d   :  { %v882_v34 = vadd.f32 %v881_v14, %v840_v16 }
 0x69e   :  { %v990_v63 = vadd.f32 %v978_v13, %v938_v59 }
 0x6a0   :  { %v1010_v41 = vadd.f32 %v996_v1, %v990_v63  ;;  %v1210_v63 = vld [vmem:[#allocation2 + $0x520] sm:$0xff]  ;;  %v1207_v1 = vld [vmem:[#allocation2 + $0x4f0] sm:$0xff] }
 0x6a3   :  { %v929_v18 = vpop.f32.mrf.mxu3 }
 0x6a4   :  { %v843_v20 = vpop.f32.mrf.mxu1  ;;  %v939_v61 = vadd.f32 %v929_v18, %v882_v34 }
 0x6a5   :  { %v885_v21 = vadd.f32 %v884_v19, %v843_v20 }
 0x6a6   :  { %v991_v3 = vadd.f32 %v981_v17, %v939_v61  ;;  %v1211_v61 = vld [vmem:[#allocation2 + $0x530] sm:$0xff] }
 0x6a8   :  { %v1011_v44 = vadd.f32 %v1000_v35, %v991_v3  ;;  %v1209_v3 = vld [vmem:[#allocation2 + $0x510] sm:$0xff] }
 0x6ab   :  { %v932_v23 = vpop.f32.mrf.mxu3 }
 0x6ac   :  { %v940_v24 = vadd.f32 %v932_v23, %v885_v21  ;;  %v846_v26 = vpop.f32.mrf.mxu1 }
 0x6ad   :  { %v888_v30 = vadd.f32 %v887_v27, %v846_v26  ;;  %v1175_v27 = vld [vmem:[#allocation2 + $0x4b0] ss:$0 sm:$0xff] }
 0x6ae   :  { %v992_v28 = vadd.f32 %v984_v22, %v940_v24  ;;  %1181 = vrot.lane.b32.xlu2 %v1175_v27, %s1741_s21 }
 0x6b0   :  { %v1012_v29 = vadd.f32 %v1004_v25, %v992_v28 }
 0x6b2   :  { %v1014_v36 = vsub.f32 0.0, %v1012_v29  ;;  %v1133_v29 = vld [vmem:[#allocation2 + $0x4b0] sm:$0xff] }
 0x6b3   :  { %v935_v39 = vpop.f32.mrf.mxu3  ;;  %1137 = vperm.xlu1 %1630, %v1133_v29  }
 0x6b4   :  { %v1016_v42 = vmul.f32 1.442695, %v1014_v36  ;;  %v941_v43 = vadd.f32 %v935_v39, %v888_v30  ;;  %v1134_v30 = vld [vmem:[#allocation2 + $0x4c0] sm:$0xff]  ;;  %v1120_v39 = vpop.permute.xlu2 %1119 }
 0x6b5   :  { %1142 = vperm.xlu0 %1629, %v1134_v30  }
 0x6b6   :  { %1663 = vpow2.f32 %v1016_v42  ;;  %v993_v45 = vadd.f32 %v987_v40, %v941_v43  ;;  %v1742_v42 = vmov 33   ;;  %v1212_v43 = vld [vmem:[#allocation2 + $0x540] sm:$0xff] }
 0x6b7   :  { %1250 = vperm.xlu2 %1632, %v1212_v43  }
 0x6b8   :  { %v1013_v48 = vadd.f32 %v1008_v46, %v993_v45 }
 0x6ba   :  { %v1015_v50 = vsub.f32 0.0, %v1013_v48  ;;  %v1118_v48 = vpop.permute.xlu0 %1117 }
 0x6bb   :  { %1631 = vset.pattern.permute.xlu1 %v1742_v42 }
 0x6bc   :  { %v1664_v51 = vpop.eup %1663  ;;  %v1018_v53 = vmul.f32 1.442695, %v1015_v50  ;;  %1178 = vperm.xlu1 %1631, %v1175_v27   ;;  %v1126_v34 = vpop.permute.xlu2 %1125 }
 0x6bd   :  { %v1020_v58 = vadd.f32 1.0, %v1664_v51  ;;  %1633 = vset.pattern.permute.xlu0 %v1730_v0 }
 0x6be   :  { %1665 = vpow2.f32 %v1018_v53  ;;  %v1128_v53 = vpop.permute.xlu1 %1127  ;;  %1245 = vperm.xlu0 %1633, %v1211_v61  }
 0x6bf   :  { %1667 = vrcp.f32 %v1020_v58  ;;  %1240 = vperm.xlu2 %1632, %v1210_v63  }
 0x6c4   :  { %v1666_v60 = vpop.eup %1665  ;;  %1634 = vset.pattern.permute.xlu1 %v1731_v6 }
 0x6c5   :  { %v1021_v62 = vadd.f32 1.0, %v1666_v60  ;;  %v1668_v31 = vpop.eup %1667  ;;  %1291 = vperm.xlu1 %1634, %v1212_v43  }
 0x6c6   :  { %v1024_v47 = vmul.f32 %v1668_v31, %v1010_v41  ;;  %1635 = vset.pattern.permute.xlu0 %v1731_v6  ;;  %v1206_v31 = vld [vmem:[#allocation2 + $0x4e0] sm:$0xff] }
 0x6c7   :  { %1669 = vrcp.f32 %v1021_v62  ;;  %v1208_v62 = vld [vmem:[#allocation2 + $0x500] sm:$0xff]  ;;  %1283 = vperm.xlu0 %1635, %v1210_v63   ;;  %1235 = vperm.xlu2 %1632, %v1209_v3  }
 0x6c8   :  { %v1031_v54 = vsel %vm1030_vm8, %v1024_v47, 0.0 }
 0x6cd   :  { %v1670_v49 = vpop.eup %1669  ;;  %1287 = vperm.xlu1 %1634, %v1211_v61   ;;  %v1743_v61 = vmov 64  }
 0x6ce   :  { %v1025_v52 = vmul.f32 %v1670_v49, %v1011_v44 }
 0x6cf   :  { %1638 = vset.pattern.permute.xlu0 %v1730_v0  ;;  %1637 = vset.pattern.permute.xlu2 %v1731_v6 }
 0x6d0   :  { %v1032_v56 = vsel %vm1030_vm8, %v1025_v52, 0.0  ;;  %1220 = vperm.xlu0 %1638, %v1206_v31   ;;  %1279 = vperm.xlu2 %1637, %v1209_v3   ;;  %v2070_v3 = vld [vmem:[#allocation2 + $0x560] sm:$0xff] }
 0x6d1   :  { %v1033_v57 = vadd.f32 %v1032_v56, %v1031_v54 }
 0x6d3   :  { %v1034_v2 = vrot.slane %v1033_v57, 4 }
 0x6d5   :  { %v1035_v4 = vadd.f32 %v1034_v2, %v1033_v57  ;;  %1636 = vset.pattern.permute.xlu1 %v1730_v0  ;;  %v1205_v2 = vld [vmem:[#allocation2 + $0x4d0] sm:$0xff] }
 0x6d6   :  { %1230 = vperm.xlu1 %1636, %v1208_v62  }
 0x6d7   :  { %v1036_v5 = vrot.slane %v1035_v4, 2 }
 0x6d8   :  { %1275 = vperm.xlu2 %1637, %v1208_v62   ;;  %v2067_v62 = vld [vmem:[#allocation2 + $0x570] sm:$0xff]  ;;  %1642 = vset.pattern.permute.xlu0 %v1743_v61 }
 0x6d9   :  { %v1037_v7 = vadd.f32 %v1036_v5, %v1035_v4 }
 0x6db   :  { %v1038_v10 = vrot.slane %v1037_v7, 1 }
 0x6dd   :  { %v1039_v8 = vadd.f32 %v1038_v10, %v1037_v7 }
 0x6de   :  { %1225 = vperm.xlu1 %1636, %v1207_v1  }
 0x6df   :  { %1570 = vmatmul.msk.f32.vlgmr.msrb.gmra.mxu1 %vm1030_vm8, %v1039_v8 }
 0x6e0   :  { %1640 = vset.pattern.permute.xlu2 %v1730_v0 }
 0x6e1   :  { %1215 = vperm.xlu2 %1640, %v1205_v2  }
 0x6e6   :  { %1639 = vset.pattern.permute.xlu1 %v1731_v6 }
 0x6e7   :  { %1271 = vperm.xlu1 %1639, %v1207_v1  }
 0x6e9   :  { %1641 = vset.pattern.permute.xlu2 %v1731_v6 }
 0x6ea   :  { %1263 = vperm.xlu2 %1641, %v1205_v2   ;;  %v2074_v2 = vld [vmem:[#allocation2 + $0x550] sm:$0xff] }
 0x6ef   :  { %1267 = vperm.xlu1 %1639, %v1206_v31  }
 0x6f2   :  { %1644 = vset.pattern.permute.xlu2 %v1743_v61 }
 0x6f3   :  { %1361 = vperm.xlu2 %1644, %v2070_v3  }
 0x6f7   :  { %1643 = vset.pattern.permute.xlu1 %v1743_v61 }
 0x6f8   :  { %1366 = vperm.xlu1 %1643, %v2067_v62  }
 0x6fb   :  { %1447 = vrot.lane.b32.xlu2 %v2074_v2, %s1744_s22 }
 0x700   :  { %1356 = vperm.xlu1 %1643, %v2074_v2  }
 0x708   :  { %v1182_v57 = vpop.permute.xlu2 %1181 }
 0x711   :  { %v1251_v5 = vpop.permute.xlu2 %1250 }
 0x719   :  { %v1241_v10 = vpop.permute.xlu2 %1240 }
 0x725   :  { %v1138_v41 = vpop.permute.xlu1 %1137 }
 0x727   :  { %v1143_v44 = vpop.permute.xlu0 %1142 }
 0x72e   :  { %v1179_v4 = vpop.permute.xlu1 %1178 }
 0x737   :  { %v1292_v7 = vpop.permute.xlu1 %1291 }
 0x73f   :  { %v1288_v8 = vpop.permute.xlu1 %1287 }
 0x75c   :  { %v1060_v9 = vpop.f32.mrf.mxu1 }
 0x75d   :  { %v1063_v11 = vperm.slane %v1060_v9, 0  ;;  %v1236_v9 = vpop.permute.xlu2 %1235 }
 0x75f   :  { %v1064_v12 = vsub.f32 %v1024_v47, %v1063_v11  ;;  %v1065_v13 = vsub.f32 %v1025_v52, %v1063_v11  ;;  %v1231_v11 = vpop.permute.xlu1 %1230 }
 0x761   :  { %v1066_v14 = vmul.f32 %v1064_v12, %v1064_v12  ;;  %v1067_v15 = vmul.f32 %v1065_v13, %v1065_v13 }
 0x763   :  { %v1068_v16 = vsel %vm1030_vm8, %v1066_v14, 0.0  ;;  %v1069_v17 = vsel %vm1030_vm8, %v1067_v15, 0.0 }
 0x764   :  { %v1070_v18 = vadd.f32 %v1069_v17, %v1068_v16 }
 0x766   :  { %v1071_v19 = vrot.slane %v1070_v18, 4 }
 0x767   :  { %v1226_v14 = vpop.permute.xlu1 %1225 }
 0x768   :  { %v1072_v20 = vadd.f32 %v1071_v19, %v1070_v18 }
 0x76a   :  { %v1073_v21 = vrot.slane %v1072_v20, 2 }
 0x76c   :  { %v1074_v22 = vadd.f32 %v1073_v21, %v1072_v20 }
 0x76e   :  { %v1075_v23 = vrot.slane %v1074_v22, 1 }
 0x76f   :  { %v1272_v17 = vpop.permute.xlu1 %1271 }
 0x770   :  { %v1076_v24 = vadd.f32 %v1075_v23, %v1074_v22 }
 0x772   :  { %1571 = vmatmul.msk.f32.vlgmr.msra.gmra.mxu2 %vm1030_vm8, %v1076_v24 }
 0x7f5   :  { %v1097_v25 = vpop.f32.mrf.mxu2 }
 0x7f6   :  { %v1098_v26 = vadd.f32 1e-05, %v1097_v25 }
 0x7f8   :  { %1671 = vrsqrt.f32 %v1098_v26  ;;  %vm1106_vm10 = vweird.f32 %v1098_v26 }
 0x7fe   :  { %v1672_v28 = vpop.eup %1671 }
 0x7ff   :  { %v1101_v33 = vmul.f32 %v1672_v28, %v1098_v26  ;;  %vm1107_vm9 = vweird.f32 %v1672_v28 }
 0x800   :  { %vm1108_vm11 = vmor %vm1106_vm10, %vm1107_vm9 }
 0x801   :  { %v1102_v36 = vmul.f32 %v1672_v28, %v1101_v33 }
 0x803   :  { %v1103_v37 = vmul.f32 0.5, %v1102_v36 }
 0x805   :  { %v1104_v38 = vsub.f32 1.5, %v1103_v37 }
 0x807   :  { %v1105_v40 = vmul.f32 %v1672_v28, %v1104_v38 }
 0x809   :  { %v1109_v45 = vsel %vm1108_vm11, %v1672_v28, %v1105_v40  ;;  %vm1520_vm11 = vcmask 253952  }
 0x80a   :  { %v1110_v46 = vperm.slane %v1109_v45, 0 }
 0x80c   :  { %v1112_v50 = vmul.f32 %v1110_v46, %v1065_v13  ;;  %v1111_v51 = vmul.f32 %v1110_v46, %v1064_v12  ;;  %v1280_v12 = vpop.permute.xlu2 %1279  ;;  %v1246_v13 = vpop.permute.xlu0 %1245 }
 0x80e   :  { %v1124_v55 = vmul.f32 %v1120_v39, %v1112_v50  ;;  %v1123_v58 = vmul.f32 %v1118_v48, %v1111_v51 }
 0x810   :  { %v1132_v59 = vadd.f32 %v1128_v53, %v1124_v55  ;;  %v1131_v60 = vadd.f32 %v1126_v34, %v1123_v58 }
 0x812   :  { %1164 = vmatpush.msra.mxu1 %v1132_v59 }
 0x814   :  { %1165 = vmatpush.msra.mxu1 %v1131_v60  ;;  %v1276_v15 = vpop.permute.xlu2 %1275  ;;  %v1284_v16 = vpop.permute.xlu0 %1283 }
 0x815   :  { %1572 = vmatmul.msk.f32.vlgmr.msra.gmra.mxu1 %vm1145_vm12, %v1133_v29 }
 0x81c   :  { %v1216_v18 = vpop.permute.xlu2 %1215  ;;  %v1221_v21 = vpop.permute.xlu0 %1220 }
 0x81d   :  { %1573 = vmatmul.msk.f32.gmra.mxu1 %vm1145_vm12, %v1134_v30  ;;  %v1268_v30 = vpop.permute.xlu1 %1267 }
 0x824   :  { %v1264_v39 = vpop.permute.xlu2 %1263 }
 0x892   :  { %v1167_v35 = vpop.f32.mrf.mxu1 }
 0x893   :  { %v1168_v49 = vadd.f32 %v1167_v35, %v1138_v41 }
 0x895   :  { %v1173_v56 = vmax.f32 %v1168_v49, 0.0 }
 0x89a   :  { %v1170_v47 = vpop.f32.mrf.mxu1 }
 0x89b   :  { %v1171_v52 = vadd.f32 %v1170_v47, %v1143_v44 }
 0x89d   :  { %v1174_v54 = vmax.f32 %v1171_v52, 0.0 }
 0x89f   :  { %1199 = vmatpush.msrb.mxu2 %v1174_v54 }
 0x8a1   :  { %1200 = vmatpush.msrb.mxu2 %v1173_v56 }
 0x8a2   :  { %1574 = vmatmul.msk.f32.vlgmr.msrb.gmra.mxu2 %vm1145_vm12, %v1182_v57 }
 0x925   :  { %v1202_v19 = vpop.f32.mrf.mxu2 }
 0x926   :  { %v1203_v0 = vadd.f32 %v1202_v19, %v1179_v4 }
 0x928   :  { %v1253_v20 = vperm.slane %v1203_v0, 0 }
 0x92a   :  { %v1261_v6 = vmul.f32 %v1253_v20, %v1251_v5  ;;  %v1260_v22 = vmul.f32 %v1253_v20, %v1246_v13  ;;  %v1259_v23 = vmul.f32 %v1253_v20, %v1241_v10  ;;  %v1258_v24 = vmul.f32 %v1253_v20, %v1236_v9  ;;  %v1353_v5 = vld [vmem:[#allocation2 + $0x580] sm:$0xff] }
 0x92b   :  { %v1257_v25 = vmul.f32 %v1253_v20, %v1231_v11  ;;  %v1256_v26 = vmul.f32 %v1253_v20, %v1226_v14  ;;  %v1255_v27 = vmul.f32 %v1253_v20, %v1221_v21  ;;  %v1254_v36 = vmul.f32 %v1253_v20, %v1216_v18  ;;  %1371 = vperm.xlu0 %1642, %v1353_v5  }
 0x92c   :  { %v1301_v28 = vadd.f32 %v1292_v7, %v1261_v6  ;;  %v1300_v29 = vadd.f32 %v1288_v8, %v1260_v22  ;;  %v2050_v32 = vadd.f32 %v1284_v16, %v1259_v23  ;;  %v2052_v33 = vadd.f32 %v1280_v12, %v1258_v24  ;;  %v1367_v6 = vpop.permute.xlu1 %1366  ;;  %v1362_v23 = vpop.permute.xlu2 %1361 }
 0x92d   :  { %v2054_v38 = vadd.f32 %v1276_v15, %v1257_v25  ;;  %v2057_v43 = vadd.f32 %v1272_v17, %v1256_v26  ;;  %v2059_v45 = vadd.f32 %v1268_v30, %v1255_v27  ;;  %v2062_v51 = vadd.f32 %v1264_v39, %v1254_v36  ;;  %v1490_v36 = vld [vmem:[#allocation2 + $0x550] ss:$0 sm:$0xff] }
 0x92e   :  { %v1317_v37 = vmin.f32 %v1301_v28, 0.0  ;;  %v1316_v40 = vmin.f32 %v1300_v29, 0.0  ;;  %v1315_v42 = vmin.f32 %v2050_v32, 0.0  ;;  %v1314_v50 = vmin.f32 %v2052_v33, 0.0 }
 0x92f   :  { %v1313_v55 = vmin.f32 %v2054_v38, 0.0  ;;  %v1312_v34 = vmin.f32 %v2057_v43, 0.0  ;;  %v1311_v59 = vmin.f32 %v2059_v45, 0.0  ;;  %v1310_v63 = vmin.f32 %v2062_v51, 0.0 }
 0x930   :  { %v1332_v46 = vmul.f32 1.442695, %v1317_v37  ;;  %v1330_v48 = vmul.f32 1.442695, %v1316_v40  ;;  %v1328_v53 = vmul.f32 1.442695, %v1315_v42 }
 0x931   :  { %v1326_v58 = vmul.f32 1.442695, %v1314_v50  ;;  %v1324_v60 = vmul.f32 1.442695, %v1313_v55  ;;  %v1322_v1 = vmul.f32 1.442695, %v1312_v34 }
 0x932   :  { %1673 = vpow2.f32 %v1332_v46  ;;  %v1320_v31 = vmul.f32 1.442695, %v1311_v59  ;;  %v1318_v41 = vmul.f32 1.442695, %v1310_v63  ;;  %vm1309_vm13 = vcmp.gt.f32.partialorder %v1301_v28, 0.0 }
 0x933   :  { %1675 = vpow2.f32 %v1330_v48  ;;  %vm1308_vm14 = vcmp.gt.f32.partialorder %v1300_v29, 0.0  ;;  %vm1307_vm15 = vcmp.gt.f32.partialorder %v2050_v32, 0.0  ;;  %vm1306_vm0 = vcmp.gt.f32.partialorder %v2052_v33, 0.0  ;;  %1449 = vrot.lane.b32.xlu0 %v2070_v3, %s1744_s22 }
 0x934   :  { %1677 = vpow2.f32 %v1328_v53  ;;  %vm1305_vm2 = vcmp.gt.f32.partialorder %v2054_v38, 0.0  ;;  %vm1304_vm3 = vcmp.gt.f32.partialorder %v2057_v43, 0.0  ;;  %vm1303_vm4 = vcmp.gt.f32.partialorder %v2059_v45, 0.0  ;;  %v1357_v26 = vpop.permute.xlu1 %1356  ;;  %v1448_v63 = vpop.permute.xlu2 %1447 }
 0x935   :  { %1679 = vpow2.f32 %v1326_v58  ;;  %vm1302_vm5 = vcmp.gt.f32.partialorder %v2062_v51, 0.0  ;;  %v1745_v40 = vmov 97  }
 0x936   :  { %1681 = vpow2.f32 %v1324_v60  ;;  %1645 = vset.pattern.permute.xlu1 %v1745_v40  ;;  %1646 = vset.pattern.permute.xlu2 %v1745_v40 }
 0x937   :  { %1683 = vpow2.f32 %v1322_v1  ;;  %1444 = vperm.xlu1 %1645, %v2070_v3   ;;  %1439 = vperm.xlu2 %1646, %v2074_v2  }
 0x938   :  { %v1674_v35 = vpop.eup %1673  ;;  %1685 = vpow2.f32 %v1320_v31  ;;  %v1747_v31 = vmov 114  }
 0x939   :  { %v1676_v44 = vpop.eup %1675  ;;  %v1582_v47 = vadd.f32 -1.0, %v1674_v35  ;;  %1687 = vpow2.f32 %v1318_v41  ;;  %1648 = vset.pattern.permute.xlu0 %v1747_v31 }
 0x93a   :  { %v1678_v49 = vpop.eup %1677  ;;  %v1581_v52 = vadd.f32 -1.0, %v1676_v44 }
 0x93b   :  { %v1680_v54 = vpop.eup %1679  ;;  %v1349_v56 = vsel %vm1309_vm13, %v1301_v28, %v1582_v47  ;;  %v1580_v57 = vadd.f32 -1.0, %v1678_v49  ;;  %1496 = vrot.lane.b32.xlu0 %v1490_v36, %s1746_s23 }
 0x93c   :  { %v1682_v4 = vpop.eup %1681  ;;  %1390 = vmatpush.msrb.mxu3 %v1349_v56  ;;  %v1348_v7 = vsel %vm1308_vm14, %v1300_v29, %v1581_v52  ;;  %v1579_v10 = vadd.f32 -1.0, %v1680_v54 }
 0x93d   :  { %v1684_v8 = vpop.eup %1683  ;;  %v1347_v9 = vsel %vm1307_vm15, %v2050_v32, %v1580_v57  ;;  %v1578_v11 = vadd.f32 -1.0, %v1682_v4 }
 0x93e   :  { %1391 = vmatpush.msrb.mxu3 %v1348_v7  ;;  %v1686_v12 = vpop.eup %1685  ;;  %v1346_v13 = vsel %vm1306_vm0, %v2052_v33, %v1579_v10  ;;  %v1577_v14 = vadd.f32 -1.0, %v1684_v8 }
 0x93f   :  { %v1688_v15 = vpop.eup %1687  ;;  %v1345_v16 = vsel %vm1305_vm2, %v2054_v38, %v1578_v11  ;;  %v1576_v17 = vadd.f32 -1.0, %v1686_v12  ;;  %1647 = vset.pattern.permute.xlu1 %v1747_v31 }
 0x940   :  { %1392 = vmatpush.msrb.mxu3 %v1347_v9  ;;  %v1344_v18 = vsel %vm1304_vm3, %v2057_v43, %v1577_v14  ;;  %v1575_v19 = vadd.f32 -1.0, %v1688_v15  ;;  %1493 = vperm.xlu1 %1647, %v1490_v36  }
 0x941   :  { %v1343_v0 = vsel %vm1303_vm4, %v2059_v45, %v1576_v17 }
 0x942   :  { %1393 = vmatpush.msrb.mxu3 %v1346_v13  ;;  %v1342_v20 = vsel %vm1302_vm5, %v2062_v51, %v1575_v19 }
 0x944   :  { %1394 = vmatpush.msrb.mxu3 %v1345_v16 }
 0x946   :  { %1395 = vmatpush.msrb.mxu3 %v1344_v18 }
 0x948   :  { %1396 = vmatpush.msrb.mxu3 %v1343_v0 }
 0x94a   :  { %1397 = vmatpush.msrb.mxu3 %v1342_v20 }
 0x94b   :  { %1583 = vmatmul.msk.f32.vlgmr.msrb.gmra.mxu3 %vm116_vm1, %v2074_v2 }
 0x953   :  { %1584 = vmatmul.msk.f32.gmra.mxu3 %vm116_vm1, %v2070_v3 }
 0x95b   :  { %1585 = vmatmul.msk.f32.gmra.mxu3 %vm116_vm1, %v2067_v62 }
 0x963   :  { %1586 = vmatmul.msk.f32.gmra.mxu3 %vm116_vm1, %v1353_v5 }
 0x991   :  { %v1440_v35 = vpop.permute.xlu2 %1439 }
 0x99d   :  { %v1372_v32 = vpop.permute.xlu0 %1371 }
 0x9a5   :  { %v1450_v3 = vpop.permute.xlu0 %1449 }
 0x9a9   :  { %v1445_v49 = vpop.permute.xlu1 %1444 }
 0x9ad   :  { %v1497_v9 = vpop.permute.xlu0 %1496 }
 0x9b2   :  { %v1494_v12 = vpop.permute.xlu1 %1493 }
 0x9ce   :  { %v1399_v21 = vpop.f32.mrf.mxu3 }
 0x9cf   :  { %v1400_v28 = vadd.f32 %v1399_v21, %v1357_v26 }
 0x9d1   :  { %v1415_v37 = vmin.f32 %v1400_v28, 0.0  ;;  %vm1411_vm9 = vcmp.gt.f32.partialorder %v1400_v28, 0.0 }
 0x9d3   :  { %v1419_v45 = vmul.f32 1.442695, %v1415_v37 }
 0x9d6   :  { %v1402_v22 = vpop.f32.mrf.mxu3 }
 0x9d7   :  { %v1403_v27 = vadd.f32 %v1402_v22, %v1362_v23 }
 0x9d9   :  { %v1416_v30 = vmin.f32 %v1403_v27, 0.0  ;;  %vm1412_vm7 = vcmp.gt.f32.partialorder %v1403_v27, 0.0 }
 0x9db   :  { %v1421_v42 = vmul.f32 1.442695, %v1416_v30 }
 0x9de   :  { %v1405_v24 = vpop.f32.mrf.mxu3 }
 0x9df   :  { %v1406_v25 = vadd.f32 %v1405_v24, %v1367_v6 }
 0x9e1   :  { %v1417_v29 = vmin.f32 %v1406_v25, 0.0  ;;  %vm1413_vm6 = vcmp.gt.f32.partialorder %v1406_v25, 0.0 }
 0x9e3   :  { %v1423_v38 = vmul.f32 1.442695, %v1417_v29 }
 0x9e5   :  { %1689 = vpow2.f32 %v1423_v38 }
 0x9e6   :  { %v1408_v33 = vpop.f32.mrf.mxu3  ;;  %1691 = vpow2.f32 %v1421_v42 }
 0x9e7   :  { %v1409_v39 = vadd.f32 %v1408_v33, %v1372_v32 }
 0x9e9   :  { %v1418_v43 = vmin.f32 %v1409_v39, 0.0  ;;  %vm1414_vm1 = vcmp.gt.f32.partialorder %v1409_v39, 0.0 }
 0x9eb   :  { %v1425_v46 = vmul.f32 1.442695, %v1418_v43  ;;  %v1690_v48 = vpop.eup %1689 }
 0x9ec   :  { %v1692_v50 = vpop.eup %1691  ;;  %v1589_v55 = vadd.f32 -1.0, %v1690_v48 }
 0x9ed   :  { %1693 = vpow2.f32 %v1425_v46  ;;  %v1588_v59 = vadd.f32 -1.0, %v1692_v50 }
 0x9ee   :  { %1695 = vpow2.f32 %v1419_v45  ;;  %v1433_v60 = vsel %vm1413_vm6, %v1406_v25, %v1589_v55 }
 0x9ef   :  { %v1432_v62 = vsel %vm1412_vm7, %v1403_v27, %v1588_v59 }
 0x9f3   :  { %v1694_v51 = vpop.eup %1693 }
 0x9f4   :  { %v1590_v53 = vadd.f32 -1.0, %v1694_v51  ;;  %v1696_v58 = vpop.eup %1695 }
 0x9f5   :  { %v1587_v61 = vadd.f32 -1.0, %v1696_v58 }
 0x9f6   :  { %v1434_v34 = vsel %vm1414_vm1, %v1409_v39, %v1590_v53 }
 0x9f7   :  { %1467 = vmatpush.msra.mxu2 %v1434_v34  ;;  %v1431_v1 = vsel %vm1411_vm9, %v1400_v28, %v1587_v61 }
 0x9f9   :  { %1468 = vmatpush.msra.mxu2 %v1433_v60 }
 0x9fb   :  { %1469 = vmatpush.msra.mxu2 %v1432_v62 }
 0x9fd   :  { %1470 = vmatpush.msra.mxu2 %v1431_v1 }
 0x9fe   :  { %1591 = vmatmul.msk.f32.vlgmr.msra.gmra.mxu2 %vm1030_vm8, %v1448_v63 }
 0xa06   :  { %1592 = vmatmul.msk.f32.gmra.mxu2 %vm1030_vm8, %v1450_v3 }
 0xa81   :  { %v1472_v41 = vpop.f32.mrf.mxu2 }
 0xa82   :  { %v1473_v44 = vadd.f32 %v1472_v41, %v1440_v35 }
 0xa84   :  { %v1480_v47 = vmin.f32 %v1473_v44, 0.0  ;;  %vm1478_vm10 = vcmp.gt.f32.partialorder %v1473_v44, 0.0 }
 0xa86   :  { %v1482_v54 = vmul.f32 1.442695, %v1480_v47 }
 0xa88   :  { %1697 = vpow2.f32 %v1482_v54 }
 0xa89   :  { %v1475_v52 = vpop.f32.mrf.mxu2 }
 0xa8a   :  { %v1476_v56 = vadd.f32 %v1475_v52, %v1445_v49 }
 0xa8c   :  { %v1481_v57 = vmin.f32 %v1476_v56, 0.0  ;;  %vm1479_vm8 = vcmp.gt.f32.partialorder %v1476_v56, 0.0 }
 0xa8e   :  { %v1484_v2 = vmul.f32 1.442695, %v1481_v57  ;;  %v1698_v4 = vpop.eup %1697 }
 0xa8f   :  { %v1593_v10 = vadd.f32 -1.0, %v1698_v4 }
 0xa90   :  { %1699 = vpow2.f32 %v1484_v2 }
 0xa91   :  { %v1488_v11 = vsel %vm1478_vm10, %v1473_v44, %v1593_v10 }
 0xa96   :  { %v1700_v5 = vpop.eup %1699 }
 0xa97   :  { %v1594_v7 = vadd.f32 -1.0, %v1700_v5 }
 0xa99   :  { %v1489_v8 = vsel %vm1479_vm8, %v1476_v56, %v1594_v7 }
 0xa9a   :  { %1514 = vmatpush.msrb.mxu0 %v1489_v8 }
 0xa9c   :  { %1515 = vmatpush.msrb.mxu0 %v1488_v11 }
 0xa9d   :  { %1595 = vmatmul.msk.f32.vlgmr.msrb.gmra.mxu0 %vm1145_vm12, %v1497_v9 }
 0xb1a   :  { %v1517_v13 = vpop.f32.mrf.mxu0 }
 0xb1b   :  { %v1518_v14 = vadd.f32 %v1517_v13, %v1494_v12 }
 0xb1d   :  { %1521 = vst.msk [vmem:[%s2108_s2] sm:$0x1] %vm1520_vm11, %v1518_v14 }
 0xb1e   :  { %1526 = vsyncpa [#allocation3], 1 }

</bundles_post_ra>
